<compile_context>
chip_gen: v6e
topology: v6e:2x2x1
jax: 0.10.0
libtpu: 0.0.40
codegen_flags: <defaults>
</compile_context>

<pallas_src>
import functools

import jax
import jax.numpy as jnp
from jax.experimental import pallas as pl
from jax.experimental.pallas import tpu as pltpu

THRESH = 0.5   # global `thresh` used by ActFun (spike = (mem > thresh))
DECAY = 0.25   # LIFNode init_decay
LANE = 128     # TPU lane width; channel dims are zero-padded to a multiple of this


def _round_up(n, m):
    return (n + m - 1) // m * m


def _block_kernel(T, L, Dp, Hp, mxu_dtype,
                  x_ref, pb_ref, qkvw_ref, qkvb_ref, lw_ref, lb_ref,
                  f1w_ref, f1b_ref, f2w_ref, f2b_ref, o_ref):
    """One batch element: the full block as a single fused recurrence over T."""

    # Loop-invariant operands: loaded once, reused by all T (unrolled) steps.
    pb = pb_ref[...]            # [L, L]   mxu dtype (band+causal mask pre-applied)
    qkv_w = qkvw_ref[...]       # [Dp, 3*Dp]
    qkv_b = qkvb_ref[...]       # [1, 3*Dp] f32
    last_w = lw_ref[...]        # [Dp, Dp]
    last_b = lb_ref[...]        # [1, Dp]  f32
    fc1_w = f1w_ref[...]        # [Dp, Hp]
    fc1_b = f1b_ref[...]        # [1, Hp]  f32
    fc2_w = f2w_ref[...]        # [Hp, Dp]
    fc2_b = f2b_ref[...]        # [1, Dp]  f32

    def lif(state, u):
        """One LIF time step.  state = (mem_f32, spike_f32) or None at t == 0.

        Matches LIFNode.forward: mem = x[0] at t=0, else
        mem = mem * decay * (1 - spike_prev) + x[t]; spike = (mem > thresh).
        Returns (new_state, boolean spike mask)."""
        if state is None:
            mem = u
        else:
            mem, sp_prev = state
            mem = mem * (DECAY * (1.0 - sp_prev)) + u
        mask = mem > THRESH
        return (mem, mask.astype(jnp.float32)), mask

    st_first = st_qkv = st_attn = st_m1 = st_m2 = None

    for t in range(T):                                       # static, unrolled (T small)
        x_t = x_ref[t, 0]                                    # [L, Dp] f32, lane-dense

        # ---------------- positional spiking attention ----------------
        st_first, m_x = lif(st_first, x_t)                   # first_lif
        qkv_t = jnp.dot(m_x.astype(mxu_dtype), qkv_w,
                        preferred_element_type=jnp.float32) + qkv_b   # q_m|k_m|v_m (+BN)
        st_qkv, m_qkv = lif(st_qkv, qkv_t)                   # q_lif|k_lif|v_lif fused
        m_q = m_qkv[:, 0:Dp]
        kv_t = (m_qkv[:, Dp:2 * Dp] & m_qkv[:, 2 * Dp:3 * Dp]).astype(mxu_dtype)
        # einsum('bhij,bhjd->bhid', pos_bias, kv) per (t, b):  attn = pb @ kv_t.
        attn_t = jnp.dot(pb, kv_t, preferred_element_type=jnp.float32)       # [L, Dp]
        ax_t = jnp.where(m_q, attn_t, 0.0)                   # q_spike * attn (0/1 gate)
        st_attn, m_a = lif(st_attn, ax_t)                    # attn_lif
        h_t = x_t + (jnp.dot(m_a.astype(mxu_dtype), last_w,
                             preferred_element_type=jnp.float32) + last_b)   # residual 1

        # ---------------- spiking MLP ----------------
        st_m1, m_1 = lif(st_m1, h_t)                         # lif1
        f1_t = jnp.dot(m_1.astype(mxu_dtype), fc1_w,
                       preferred_element_type=jnp.float32) + fc1_b           # fc1 (+ln1)
        st_m2, m_2 = lif(st_m2, f1_t)                        # lif2
        f2_t = jnp.dot(m_2.astype(mxu_dtype), fc2_w,
                       preferred_element_type=jnp.float32) + fc2_b           # fc2 (+ln2)

        o_ref[t, 0] = h_t + f2_t                             # residual 2, unmasked store


def block_forward(x_tbld, params, *, mxu_dtype=jnp.bfloat16):
    """x_tbld: [T, B, L, D] float32 (PyTorch layout).  Returns [T, B, L, D] f32.

    mxu_dtype=bf16 by default (spike operands are exact 0/1; weights/pos_bias
    round to ~3 decimal digits — fine for eval).  Pass jnp.float32 for bitwise-
    closer numerics.  NOTE: weights are stored [D_in, D_out]; transpose PyTorch
    nn.Linear weights ([D_out, D_in]) when loading real checkpoints.
    """
    T, B, L, D = x_tbld.shape
    H = params["fc1_w"].shape[1]
    Dp = _round_up(D, LANE)
    Hp = _round_up(H, LANE)

    def fold(wk, bk, sk, hk, rows, cols):
        # (x @ W + b) * scale + shift  ==  x @ (W*scale) + (b*scale + shift)
        w = params[wk] * params[sk][None, :]
        b = params[bk] * params[sk] + params[hk]
        w = jnp.pad(w, ((0, rows - w.shape[0]), (0, cols - w.shape[1])))
        b = jnp.pad(b, (0, cols - b.shape[0]))[None, :]
        return w.astype(mxu_dtype), b.astype(jnp.float32)

    qw, qb = fold("q_w", "q_b", "q_scale", "q_shift", Dp, Dp)
    kw, kb = fold("k_w", "k_b", "k_scale", "k_shift", Dp, Dp)
    vw, vb = fold("v_w", "v_b", "v_scale", "v_shift", Dp, Dp)
    qkv_w = jnp.concatenate([qw, kw, vw], axis=1)                   # [Dp, 3*Dp]
    qkv_b = jnp.concatenate([qb, kb, vb], axis=1)                   # [1, 3*Dp]
    last_w, last_b = fold("last_w", "last_b", "last_scale", "last_shift", Dp, Dp)
    fc1_w, fc1_b = fold("fc1_w", "fc1_b", "ln1_scale", "ln1_shift", Dp, Hp)
    fc2_w, fc2_b = fold("fc2_w", "fc2_b", "ln2_scale", "ln2_shift", Hp, Dp)

    pb = params["pos_bias_eff"].astype(mxu_dtype)                   # [L, L]

    # Zero-pad channels to the lane width; padded channels stay exactly 0
    # through every LIF / matmul / residual, so slicing at the end is exact.
    x_pad = jnp.pad(x_tbld, ((0, 0), (0, 0), (0, 0), (0, Dp - D)))  # [T, B, L, Dp]

    wspec = lambda shape: pl.BlockSpec(shape, lambda b: (0, 0))     # resident weights

    out = pl.pallas_call(
        functools.partial(_block_kernel, T, L, Dp, Hp, mxu_dtype),
        out_shape=jax.ShapeDtypeStruct((T, B, L, Dp), jnp.float32),
        grid_spec=pltpu.PrefetchScalarGridSpec(
            num_scalar_prefetch=0,
            grid=(B,),                                              # per-batch blocks
            in_specs=[
                pl.BlockSpec((T, 1, L, Dp), lambda b: (0, b, 0, 0)),  # x
                wspec((L, L)),           # pos_bias (masked)
                wspec((Dp, 3 * Dp)),     # fused q|k|v weight
                wspec((1, 3 * Dp)),      # fused q|k|v bias
                wspec((Dp, Dp)),         # last_m weight
                wspec((1, Dp)),          # last_m bias
                wspec((Dp, Hp)),         # fc1 weight
                wspec((1, Hp)),          # fc1 bias
                wspec((Hp, Dp)),         # fc2 weight
                wspec((1, Dp)),          # fc2 bias
            ],
            out_specs=pl.BlockSpec((T, 1, L, Dp), lambda b: (0, b, 0, 0)),
        ),
        compiler_params=pltpu.CompilerParams(
            dimension_semantics=("parallel",)),
    )(x_pad, pb, qkv_w, qkv_b, last_w, last_b, fc1_w, fc1_b, fc2_w, fc2_b)
    return out[..., :D]


def init_params(key, dim, hidden, seq_len, window_size):
    keys = iter(jax.random.split(key, 64))

    def lin(din, dout):
        w = jax.random.normal(next(keys), (din, dout), jnp.float32) / jnp.sqrt(float(din))
        b = jax.random.normal(next(keys), (dout,), jnp.float32) * 0.05
        return w, b

    def bn(d):
        gamma = jax.random.uniform(next(keys), (d,), jnp.float32, 0.5, 1.5)
        beta = jax.random.normal(next(keys), (d,), jnp.float32) * 0.05
        rmean = jax.random.normal(next(keys), (d,), jnp.float32) * 0.1
        rvar = jax.random.uniform(next(keys), (d,), jnp.float32, 0.5, 1.5)
        scale = gamma / jnp.sqrt(rvar + 1e-5)
        shift = beta - rmean * scale
        return scale, shift

    p = {}
    p["q_w"], p["q_b"] = lin(dim, dim);        p["q_scale"], p["q_shift"] = bn(dim)
    p["k_w"], p["k_b"] = lin(dim, dim);        p["k_scale"], p["k_shift"] = bn(dim)
    p["v_w"], p["v_b"] = lin(dim, dim);        p["v_scale"], p["v_shift"] = bn(dim)
    p["last_w"], p["last_b"] = lin(dim, dim);  p["last_scale"], p["last_shift"] = bn(dim)
    p["fc1_w"], p["fc1_b"] = lin(dim, hidden); p["ln1_scale"], p["ln1_shift"] = bn(hidden)
    p["fc2_w"], p["fc2_b"] = lin(hidden, dim); p["ln2_scale"], p["ln2_shift"] = bn(dim)

    # pos_bias parameter [seq_len, seq_len], masked by the local band
    # (|i-j| <= window_size-1) and the causal lower triangle, exactly as at the
    # top of positional_spiking_attention.forward (attention_mask=None).
    pos_bias = jax.random.uniform(next(keys), (seq_len, seq_len), jnp.float32, 0.5, 1.5)
    i = jnp.arange(seq_len)[:, None]
    j = jnp.arange(seq_len)[None, :]
    band = (jnp.abs(i - j) <= (window_size - 1)).astype(jnp.float32)
    causal = (j <= i).astype(jnp.float32)
    p["pos_bias_eff"] = pos_bias * band * causal
    return p


if __name__ == "__main__":
    # Small shapes consistent with the module: T time steps, batch B, seq L,
    # embedding D (divisible by heads=4), hidden = 4*D, window_size = 4.
    T, B, L, D, WINDOW = 4, 2, 8, 32, 4
    HIDDEN = 4 * D

    key = jax.random.PRNGKey(0)
    kx, kp = jax.random.split(key)
    x = jax.random.normal(kx, (T, B, L, D), jnp.float32)
    params = init_params(kp, D, HIDDEN, L, WINDOW)

    out = block_forward(x, params)   # bf16 MXU path by default; pass mxu_dtype=jnp.float32 for f32
    out = jax.block_until_ready(out)
    assert out.shape == (T, B, L, D) and out.dtype == jnp.float32
    print("KERNEL_OK")
</pallas_src>

<mosaic_0001>
module attributes {stable_mosaic.version = 11 : i64} {
  func.func @_block_kernel(%arg0: i32, %arg1: memref<4x1x8x128xf32, #tpu.memory_space<vmem>>, %arg2: memref<8x8xbf16, #tpu.memory_space<vmem>>, %arg3: memref<128x384xbf16, #tpu.memory_space<vmem>>, %arg4: memref<1x384xf32, #tpu.memory_space<vmem>>, %arg5: memref<128x128xbf16, #tpu.memory_space<vmem>>, %arg6: memref<1x128xf32, #tpu.memory_space<vmem>>, %arg7: memref<128x128xbf16, #tpu.memory_space<vmem>>, %arg8: memref<1x128xf32, #tpu.memory_space<vmem>>, %arg9: memref<128x128xbf16, #tpu.memory_space<vmem>>, %arg10: memref<1x128xf32, #tpu.memory_space<vmem>>, %arg11: memref<4x1x8x128xf32, #tpu.memory_space<vmem>>) attributes {dimension_semantics = [#tpu.dimension_semantics<parallel>], iteration_bounds = array<i64: 2>, scalar_prefetch = 0 : i64, scratch_operands = 0 : i64, tpu.core_type = #tpu.core_type<tc>, window_params = [{transform_indices = @transform_0, window_bounds = array<i64: 4, 1, 8, 128>}, {pipeline_mode = #tpu.pipeline_mode<synchronous>, transform_indices = @transform_1, window_bounds = array<i64: 8, 8>}, {pipeline_mode = #tpu.pipeline_mode<synchronous>, transform_indices = @transform_2, window_bounds = array<i64: 128, 384>}, {pipeline_mode = #tpu.pipeline_mode<synchronous>, transform_indices = @transform_3, window_bounds = array<i64: 1, 384>}, {pipeline_mode = #tpu.pipeline_mode<synchronous>, transform_indices = @transform_4, window_bounds = array<i64: 128, 128>}, {pipeline_mode = #tpu.pipeline_mode<synchronous>, transform_indices = @transform_5, window_bounds = array<i64: 1, 128>}, {pipeline_mode = #tpu.pipeline_mode<synchronous>, transform_indices = @transform_6, window_bounds = array<i64: 128, 128>}, {pipeline_mode = #tpu.pipeline_mode<synchronous>, transform_indices = @transform_7, window_bounds = array<i64: 1, 128>}, {pipeline_mode = #tpu.pipeline_mode<synchronous>, transform_indices = @transform_8, window_bounds = array<i64: 128, 128>}, {pipeline_mode = #tpu.pipeline_mode<synchronous>, transform_indices = @transform_9, window_bounds = array<i64: 1, 128>}, {transform_indices = @transform_10, window_bounds = array<i64: 4, 1, 8, 128>}]} {
    %c0 = arith.constant 0 : index
    %c0_0 = arith.constant 0 : index
    %0 = vector.load %arg2[%c0, %c0_0] : memref<8x8xbf16, #tpu.memory_space<vmem>>, vector<8x8xbf16>
    %c0_1 = arith.constant 0 : index
    %c0_2 = arith.constant 0 : index
    %1 = vector.load %arg3[%c0_1, %c0_2] : memref<128x384xbf16, #tpu.memory_space<vmem>>, vector<128x384xbf16>
    %c0_3 = arith.constant 0 : index
    %c0_4 = arith.constant 0 : index
    %2 = vector.load %arg4[%c0_3, %c0_4] : memref<1x384xf32, #tpu.memory_space<vmem>>, vector<1x384xf32>
    %c0_5 = arith.constant 0 : index
    %c0_6 = arith.constant 0 : index
    %3 = vector.load %arg5[%c0_5, %c0_6] : memref<128x128xbf16, #tpu.memory_space<vmem>>, vector<128x128xbf16>
    %c0_7 = arith.constant 0 : index
    %c0_8 = arith.constant 0 : index
    %4 = vector.load %arg6[%c0_7, %c0_8] : memref<1x128xf32, #tpu.memory_space<vmem>>, vector<1x128xf32>
    %c0_9 = arith.constant 0 : index
    %c0_10 = arith.constant 0 : index
    %5 = vector.load %arg7[%c0_9, %c0_10] : memref<128x128xbf16, #tpu.memory_space<vmem>>, vector<128x128xbf16>
    %c0_11 = arith.constant 0 : index
    %c0_12 = arith.constant 0 : index
    %6 = vector.load %arg8[%c0_11, %c0_12] : memref<1x128xf32, #tpu.memory_space<vmem>>, vector<1x128xf32>
    %c0_13 = arith.constant 0 : index
    %c0_14 = arith.constant 0 : index
    %7 = vector.load %arg9[%c0_13, %c0_14] : memref<128x128xbf16, #tpu.memory_space<vmem>>, vector<128x128xbf16>
    %c0_15 = arith.constant 0 : index
    %c0_16 = arith.constant 0 : index
    %8 = vector.load %arg10[%c0_15, %c0_16] : memref<1x128xf32, #tpu.memory_space<vmem>>, vector<1x128xf32>
    %c0_17 = arith.constant 0 : index
    %c0_18 = arith.constant 0 : index
    %c0_19 = arith.constant 0 : index
    %c0_20 = arith.constant 0 : index
    %9 = vector.load %arg1[%c0_17, %c0_18, %c0_19, %c0_20] : memref<4x1x8x128xf32, #tpu.memory_space<vmem>>, vector<1x1x8x128xf32>
    %10 = vector.shape_cast %9 : vector<1x1x8x128xf32> to vector<8x128xf32>
    %cst = arith.constant 5.000000e-01 : f32
    %11 = vector.broadcast %cst : f32 to vector<8x128xf32>
    %12 = arith.cmpf ogt, %10, %11 : vector<8x128xf32>
    %13 = arith.extui %12 : vector<8x128xi1> to vector<8x128xi32>
    %14 = arith.sitofp %13 : vector<8x128xi32> to vector<8x128xf32>
    %15 = arith.extui %12 : vector<8x128xi1> to vector<8x128xi32>
    %16 = arith.sitofp %15 : vector<8x128xi32> to vector<8x128xf32>
    %17 = arith.truncf %16 : vector<8x128xf32> to vector<8x128xbf16>
    %cst_21 = arith.constant dense<0.000000e+00> : vector<8x384xf32>
    %18 = tpu.matmul %17, %1, %cst_21 {dimension_numbers = #tpu.dot_dimension_numbers<[1], [0], [0], [1], [0, 0, 1, 1], [], []>} : vector<8x128xbf16>, vector<128x384xbf16>, vector<8x384xf32> -> vector<8x384xf32>
    %19 = vector.broadcast %2 : vector<1x384xf32> to vector<8x384xf32>
    %20 = arith.addf %18, %19 : vector<8x384xf32>
    %cst_22 = arith.constant 5.000000e-01 : f32
    %21 = vector.broadcast %cst_22 : f32 to vector<8x384xf32>
    %22 = arith.cmpf ogt, %20, %21 : vector<8x384xf32>
    %23 = arith.extui %22 : vector<8x384xi1> to vector<8x384xi32>
    %24 = arith.sitofp %23 : vector<8x384xi32> to vector<8x384xf32>
    %25 = vector.extract_strided_slice %22 {offsets = [0, 0], sizes = [8, 128], strides = [1, 1]} : vector<8x384xi1> to vector<8x128xi1>
    %26 = vector.extract_strided_slice %22 {offsets = [0, 128], sizes = [8, 128], strides = [1, 1]} : vector<8x384xi1> to vector<8x128xi1>
    %27 = vector.extract_strided_slice %22 {offsets = [0, 256], sizes = [8, 128], strides = [1, 1]} : vector<8x384xi1> to vector<8x128xi1>
    %28 = arith.andi %26, %27 : vector<8x128xi1>
    %29 = arith.extui %28 : vector<8x128xi1> to vector<8x128xi32>
    %30 = arith.sitofp %29 : vector<8x128xi32> to vector<8x128xf32>
    %31 = arith.truncf %30 : vector<8x128xf32> to vector<8x128xbf16>
    %cst_23 = arith.constant dense<0.000000e+00> : vector<8x128xf32>
    %32 = tpu.matmul %0, %31, %cst_23 {dimension_numbers = #tpu.dot_dimension_numbers<[1], [0], [0], [1], [0, 0, 1, 1], [], []>} : vector<8x8xbf16>, vector<8x128xbf16>, vector<8x128xf32> -> vector<8x128xf32>
    %cst_24 = arith.constant 0.000000e+00 : f32
    %33 = vector.broadcast %cst_24 : f32 to vector<8x128xf32>
    %34 = arith.select %25, %32, %33 : vector<8x128xi1>, vector<8x128xf32>
    %cst_25 = arith.constant 5.000000e-01 : f32
    %35 = vector.broadcast %cst_25 : f32 to vector<8x128xf32>
    %36 = arith.cmpf ogt, %34, %35 : vector<8x128xf32>
    %37 = arith.extui %36 : vector<8x128xi1> to vector<8x128xi32>
    %38 = arith.sitofp %37 : vector<8x128xi32> to vector<8x128xf32>
    %39 = arith.extui %36 : vector<8x128xi1> to vector<8x128xi32>
    %40 = arith.sitofp %39 : vector<8x128xi32> to vector<8x128xf32>
    %41 = arith.truncf %40 : vector<8x128xf32> to vector<8x128xbf16>
    %cst_26 = arith.constant dense<0.000000e+00> : vector<8x128xf32>
    %42 = tpu.matmul %41, %3, %cst_26 {dimension_numbers = #tpu.dot_dimension_numbers<[1], [0], [0], [1], [0, 0, 1, 1], [], []>} : vector<8x128xbf16>, vector<128x128xbf16>, vector<8x128xf32> -> vector<8x128xf32>
    %43 = vector.broadcast %4 : vector<1x128xf32> to vector<8x128xf32>
    %44 = arith.addf %42, %43 : vector<8x128xf32>
    %45 = arith.addf %10, %44 : vector<8x128xf32>
    %cst_27 = arith.constant 5.000000e-01 : f32
    %46 = vector.broadcast %cst_27 : f32 to vector<8x128xf32>
    %47 = arith.cmpf ogt, %45, %46 : vector<8x128xf32>
    %48 = arith.extui %47 : vector<8x128xi1> to vector<8x128xi32>
    %49 = arith.sitofp %48 : vector<8x128xi32> to vector<8x128xf32>
    %50 = arith.extui %47 : vector<8x128xi1> to vector<8x128xi32>
    %51 = arith.sitofp %50 : vector<8x128xi32> to vector<8x128xf32>
    %52 = arith.truncf %51 : vector<8x128xf32> to vector<8x128xbf16>
    %cst_28 = arith.constant dense<0.000000e+00> : vector<8x128xf32>
    %53 = tpu.matmul %52, %5, %cst_28 {dimension_numbers = #tpu.dot_dimension_numbers<[1], [0], [0], [1], [0, 0, 1, 1], [], []>} : vector<8x128xbf16>, vector<128x128xbf16>, vector<8x128xf32> -> vector<8x128xf32>
    %54 = vector.broadcast %6 : vector<1x128xf32> to vector<8x128xf32>
    %55 = arith.addf %53, %54 : vector<8x128xf32>
    %cst_29 = arith.constant 5.000000e-01 : f32
    %56 = vector.broadcast %cst_29 : f32 to vector<8x128xf32>
    %57 = arith.cmpf ogt, %55, %56 : vector<8x128xf32>
    %58 = arith.extui %57 : vector<8x128xi1> to vector<8x128xi32>
    %59 = arith.sitofp %58 : vector<8x128xi32> to vector<8x128xf32>
    %60 = arith.extui %57 : vector<8x128xi1> to vector<8x128xi32>
    %61 = arith.sitofp %60 : vector<8x128xi32> to vector<8x128xf32>
    %62 = arith.truncf %61 : vector<8x128xf32> to vector<8x128xbf16>
    %cst_30 = arith.constant dense<0.000000e+00> : vector<8x128xf32>
    %63 = tpu.matmul %62, %7, %cst_30 {dimension_numbers = #tpu.dot_dimension_numbers<[1], [0], [0], [1], [0, 0, 1, 1], [], []>} : vector<8x128xbf16>, vector<128x128xbf16>, vector<8x128xf32> -> vector<8x128xf32>
    %64 = vector.broadcast %8 : vector<1x128xf32> to vector<8x128xf32>
    %65 = arith.addf %63, %64 : vector<8x128xf32>
    %66 = arith.addf %45, %65 : vector<8x128xf32>
    %c0_31 = arith.constant 0 : index
    %c0_32 = arith.constant 0 : index
    %c0_33 = arith.constant 0 : index
    %c0_34 = arith.constant 0 : index
    %67 = vector.load %arg11[%c0_31, %c0_32, %c0_33, %c0_34] : memref<4x1x8x128xf32, #tpu.memory_space<vmem>>, vector<1x1x8x128xf32>
    %68 = vector.shape_cast %67 : vector<1x1x8x128xf32> to vector<8x128xf32>
    %69 = vector.shape_cast %66 : vector<8x128xf32> to vector<1x1x8x128xf32>
    tpu.vector_store %arg11[%c0_31, %c0_32, %c0_33, %c0_34], %69 {strides = array<i32>} : memref<4x1x8x128xf32, #tpu.memory_space<vmem>>, vector<1x1x8x128xf32>,
    %c1 = arith.constant 1 : index
    %c0_35 = arith.constant 0 : index
    %c0_36 = arith.constant 0 : index
    %c0_37 = arith.constant 0 : index
    %70 = vector.load %arg1[%c1, %c0_35, %c0_36, %c0_37] : memref<4x1x8x128xf32, #tpu.memory_space<vmem>>, vector<1x1x8x128xf32>
    %71 = vector.shape_cast %70 : vector<1x1x8x128xf32> to vector<8x128xf32>
    %cst_38 = arith.constant 1.000000e+00 : f32
    %72 = vector.broadcast %cst_38 : f32 to vector<8x128xf32>
    %73 = arith.subf %72, %14 : vector<8x128xf32>
    %cst_39 = arith.constant 2.500000e-01 : f32
    %74 = vector.broadcast %cst_39 : f32 to vector<8x128xf32>
    %75 = arith.mulf %74, %73 : vector<8x128xf32>
    %76 = arith.mulf %10, %75 : vector<8x128xf32>
    %77 = arith.addf %76, %71 : vector<8x128xf32>
    %cst_40 = arith.constant 5.000000e-01 : f32
    %78 = vector.broadcast %cst_40 : f32 to vector<8x128xf32>
    %79 = arith.cmpf ogt, %77, %78 : vector<8x128xf32>
    %80 = arith.extui %79 : vector<8x128xi1> to vector<8x128xi32>
    %81 = arith.sitofp %80 : vector<8x128xi32> to vector<8x128xf32>
    %82 = arith.extui %79 : vector<8x128xi1> to vector<8x128xi32>
    %83 = arith.sitofp %82 : vector<8x128xi32> to vector<8x128xf32>
    %84 = arith.truncf %83 : vector<8x128xf32> to vector<8x128xbf16>
    %cst_41 = arith.constant dense<0.000000e+00> : vector<8x384xf32>
    %85 = tpu.matmul %84, %1, %cst_41 {dimension_numbers = #tpu.dot_dimension_numbers<[1], [0], [0], [1], [0, 0, 1, 1], [], []>} : vector<8x128xbf16>, vector<128x384xbf16>, vector<8x384xf32> -> vector<8x384xf32>
    %86 = vector.broadcast %2 : vector<1x384xf32> to vector<8x384xf32>
    %87 = arith.addf %85, %86 : vector<8x384xf32>
    %cst_42 = arith.constant 1.000000e+00 : f32
    %88 = vector.broadcast %cst_42 : f32 to vector<8x384xf32>
    %89 = arith.subf %88, %24 : vector<8x384xf32>
    %cst_43 = arith.constant 2.500000e-01 : f32
    %90 = vector.broadcast %cst_43 : f32 to vector<8x384xf32>
    %91 = arith.mulf %90, %89 : vector<8x384xf32>
    %92 = arith.mulf %20, %91 : vector<8x384xf32>
    %93 = arith.addf %92, %87 : vector<8x384xf32>
    %cst_44 = arith.constant 5.000000e-01 : f32
    %94 = vector.broadcast %cst_44 : f32 to vector<8x384xf32>
    %95 = arith.cmpf ogt, %93, %94 : vector<8x384xf32>
    %96 = arith.extui %95 : vector<8x384xi1> to vector<8x384xi32>
    %97 = arith.sitofp %96 : vector<8x384xi32> to vector<8x384xf32>
    %98 = vector.extract_strided_slice %95 {offsets = [0, 0], sizes = [8, 128], strides = [1, 1]} : vector<8x384xi1> to vector<8x128xi1>
    %99 = vector.extract_strided_slice %95 {offsets = [0, 128], sizes = [8, 128], strides = [1, 1]} : vector<8x384xi1> to vector<8x128xi1>
    %100 = vector.extract_strided_slice %95 {offsets = [0, 256], sizes = [8, 128], strides = [1, 1]} : vector<8x384xi1> to vector<8x128xi1>
    %101 = arith.andi %99, %100 : vector<8x128xi1>
    %102 = arith.extui %101 : vector<8x128xi1> to vector<8x128xi32>
    %103 = arith.sitofp %102 : vector<8x128xi32> to vector<8x128xf32>
    %104 = arith.truncf %103 : vector<8x128xf32> to vector<8x128xbf16>
    %cst_45 = arith.constant dense<0.000000e+00> : vector<8x128xf32>
    %105 = tpu.matmul %0, %104, %cst_45 {dimension_numbers = #tpu.dot_dimension_numbers<[1], [0], [0], [1], [0, 0, 1, 1], [], []>} : vector<8x8xbf16>, vector<8x128xbf16>, vector<8x128xf32> -> vector<8x128xf32>
    %cst_46 = arith.constant 0.000000e+00 : f32
    %106 = vector.broadcast %cst_46 : f32 to vector<8x128xf32>
    %107 = arith.select %98, %105, %106 : vector<8x128xi1>, vector<8x128xf32>
    %cst_47 = arith.constant 1.000000e+00 : f32
    %108 = vector.broadcast %cst_47 : f32 to vector<8x128xf32>
    %109 = arith.subf %108, %38 : vector<8x128xf32>
    %cst_48 = arith.constant 2.500000e-01 : f32
    %110 = vector.broadcast %cst_48 : f32 to vector<8x128xf32>
    %111 = arith.mulf %110, %109 : vector<8x128xf32>
    %112 = arith.mulf %34, %111 : vector<8x128xf32>
    %113 = arith.addf %112, %107 : vector<8x128xf32>
    %cst_49 = arith.constant 5.000000e-01 : f32
    %114 = vector.broadcast %cst_49 : f32 to vector<8x128xf32>
    %115 = arith.cmpf ogt, %113, %114 : vector<8x128xf32>
    %116 = arith.extui %115 : vector<8x128xi1> to vector<8x128xi32>
    %117 = arith.sitofp %116 : vector<8x128xi32> to vector<8x128xf32>
    %118 = arith.extui %115 : vector<8x128xi1> to vector<8x128xi32>
    %119 = arith.sitofp %118 : vector<8x128xi32> to vector<8x128xf32>
    %120 = arith.truncf %119 : vector<8x128xf32> to vector<8x128xbf16>
    %cst_50 = arith.constant dense<0.000000e+00> : vector<8x128xf32>
    %121 = tpu.matmul %120, %3, %cst_50 {dimension_numbers = #tpu.dot_dimension_numbers<[1], [0], [0], [1], [0, 0, 1, 1], [], []>} : vector<8x128xbf16>, vector<128x128xbf16>, vector<8x128xf32> -> vector<8x128xf32>
    %122 = vector.broadcast %4 : vector<1x128xf32> to vector<8x128xf32>
    %123 = arith.addf %121, %122 : vector<8x128xf32>
    %124 = arith.addf %71, %123 : vector<8x128xf32>
    %cst_51 = arith.constant 1.000000e+00 : f32
    %125 = vector.broadcast %cst_51 : f32 to vector<8x128xf32>
    %126 = arith.subf %125, %49 : vector<8x128xf32>
    %cst_52 = arith.constant 2.500000e-01 : f32
    %127 = vector.broadcast %cst_52 : f32 to vector<8x128xf32>
    %128 = arith.mulf %127, %126 : vector<8x128xf32>
    %129 = arith.mulf %45, %128 : vector<8x128xf32>
    %130 = arith.addf %129, %124 : vector<8x128xf32>
    %cst_53 = arith.constant 5.000000e-01 : f32
    %131 = vector.broadcast %cst_53 : f32 to vector<8x128xf32>
    %132 = arith.cmpf ogt, %130, %131 : vector<8x128xf32>
    %133 = arith.extui %132 : vector<8x128xi1> to vector<8x128xi32>
    %134 = arith.sitofp %133 : vector<8x128xi32> to vector<8x128xf32>
    %135 = arith.extui %132 : vector<8x128xi1> to vector<8x128xi32>
    %136 = arith.sitofp %135 : vector<8x128xi32> to vector<8x128xf32>
    %137 = arith.truncf %136 : vector<8x128xf32> to vector<8x128xbf16>
    %cst_54 = arith.constant dense<0.000000e+00> : vector<8x128xf32>
    %138 = tpu.matmul %137, %5, %cst_54 {dimension_numbers = #tpu.dot_dimension_numbers<[1], [0], [0], [1], [0, 0, 1, 1], [], []>} : vector<8x128xbf16>, vector<128x128xbf16>, vector<8x128xf32> -> vector<8x128xf32>
    %139 = vector.broadcast %6 : vector<1x128xf32> to vector<8x128xf32>
    %140 = arith.addf %138, %139 : vector<8x128xf32>
    %cst_55 = arith.constant 1.000000e+00 : f32
    %141 = vector.broadcast %cst_55 : f32 to vector<8x128xf32>
    %142 = arith.subf %141, %59 : vector<8x128xf32>
    %cst_56 = arith.constant 2.500000e-01 : f32
    %143 = vector.broadcast %cst_56 : f32 to vector<8x128xf32>
    %144 = arith.mulf %143, %142 : vector<8x128xf32>
    %145 = arith.mulf %55, %144 : vector<8x128xf32>
    %146 = arith.addf %145, %140 : vector<8x128xf32>
    %cst_57 = arith.constant 5.000000e-01 : f32
    %147 = vector.broadcast %cst_57 : f32 to vector<8x128xf32>
    %148 = arith.cmpf ogt, %146, %147 : vector<8x128xf32>
    %149 = arith.extui %148 : vector<8x128xi1> to vector<8x128xi32>
    %150 = arith.sitofp %149 : vector<8x128xi32> to vector<8x128xf32>
    %151 = arith.extui %148 : vector<8x128xi1> to vector<8x128xi32>
    %152 = arith.sitofp %151 : vector<8x128xi32> to vector<8x128xf32>
    %153 = arith.truncf %152 : vector<8x128xf32> to vector<8x128xbf16>
    %cst_58 = arith.constant dense<0.000000e+00> : vector<8x128xf32>
    %154 = tpu.matmul %153, %7, %cst_58 {dimension_numbers = #tpu.dot_dimension_numbers<[1], [0], [0], [1], [0, 0, 1, 1], [], []>} : vector<8x128xbf16>, vector<128x128xbf16>, vector<8x128xf32> -> vector<8x128xf32>
    %155 = vector.broadcast %8 : vector<1x128xf32> to vector<8x128xf32>
    %156 = arith.addf %154, %155 : vector<8x128xf32>
    %157 = arith.addf %124, %156 : vector<8x128xf32>
    %c1_59 = arith.constant 1 : index
    %c0_60 = arith.constant 0 : index
    %c0_61 = arith.constant 0 : index
    %c0_62 = arith.constant 0 : index
    %158 = vector.load %arg11[%c1_59, %c0_60, %c0_61, %c0_62] : memref<4x1x8x128xf32, #tpu.memory_space<vmem>>, vector<1x1x8x128xf32>
    %159 = vector.shape_cast %158 : vector<1x1x8x128xf32> to vector<8x128xf32>
    %160 = vector.shape_cast %157 : vector<8x128xf32> to vector<1x1x8x128xf32>
    tpu.vector_store %arg11[%c1_59, %c0_60, %c0_61, %c0_62], %160 {strides = array<i32>} : memref<4x1x8x128xf32, #tpu.memory_space<vmem>>, vector<1x1x8x128xf32>,
    %c2 = arith.constant 2 : index
    %c0_63 = arith.constant 0 : index
    %c0_64 = arith.constant 0 : index
    %c0_65 = arith.constant 0 : index
    %161 = vector.load %arg1[%c2, %c0_63, %c0_64, %c0_65] : memref<4x1x8x128xf32, #tpu.memory_space<vmem>>, vector<1x1x8x128xf32>
    %162 = vector.shape_cast %161 : vector<1x1x8x128xf32> to vector<8x128xf32>
    %cst_66 = arith.constant 1.000000e+00 : f32
    %163 = vector.broadcast %cst_66 : f32 to vector<8x128xf32>
    %164 = arith.subf %163, %81 : vector<8x128xf32>
    %cst_67 = arith.constant 2.500000e-01 : f32
    %165 = vector.broadcast %cst_67 : f32 to vector<8x128xf32>
    %166 = arith.mulf %165, %164 : vector<8x128xf32>
    %167 = arith.mulf %77, %166 : vector<8x128xf32>
    %168 = arith.addf %167, %162 : vector<8x128xf32>
    %cst_68 = arith.constant 5.000000e-01 : f32
    %169 = vector.broadcast %cst_68 : f32 to vector<8x128xf32>
    %170 = arith.cmpf ogt, %168, %169 : vector<8x128xf32>
    %171 = arith.extui %170 : vector<8x128xi1> to vector<8x128xi32>
    %172 = arith.sitofp %171 : vector<8x128xi32> to vector<8x128xf32>
    %173 = arith.extui %170 : vector<8x128xi1> to vector<8x128xi32>
    %174 = arith.sitofp %173 : vector<8x128xi32> to vector<8x128xf32>
    %175 = arith.truncf %174 : vector<8x128xf32> to vector<8x128xbf16>
    %cst_69 = arith.constant dense<0.000000e+00> : vector<8x384xf32>
    %176 = tpu.matmul %175, %1, %cst_69 {dimension_numbers = #tpu.dot_dimension_numbers<[1], [0], [0], [1], [0, 0, 1, 1], [], []>} : vector<8x128xbf16>, vector<128x384xbf16>, vector<8x384xf32> -> vector<8x384xf32>
    %177 = vector.broadcast %2 : vector<1x384xf32> to vector<8x384xf32>
    %178 = arith.addf %176, %177 : vector<8x384xf32>
    %cst_70 = arith.constant 1.000000e+00 : f32
    %179 = vector.broadcast %cst_70 : f32 to vector<8x384xf32>
    %180 = arith.subf %179, %97 : vector<8x384xf32>
    %cst_71 = arith.constant 2.500000e-01 : f32
    %181 = vector.broadcast %cst_71 : f32 to vector<8x384xf32>
    %182 = arith.mulf %181, %180 : vector<8x384xf32>
    %183 = arith.mulf %93, %182 : vector<8x384xf32>
    %184 = arith.addf %183, %178 : vector<8x384xf32>
    %cst_72 = arith.constant 5.000000e-01 : f32
    %185 = vector.broadcast %cst_72 : f32 to vector<8x384xf32>
    %186 = arith.cmpf ogt, %184, %185 : vector<8x384xf32>
    %187 = arith.extui %186 : vector<8x384xi1> to vector<8x384xi32>
    %188 = arith.sitofp %187 : vector<8x384xi32> to vector<8x384xf32>
    %189 = vector.extract_strided_slice %186 {offsets = [0, 0], sizes = [8, 128], strides = [1, 1]} : vector<8x384xi1> to vector<8x128xi1>
    %190 = vector.extract_strided_slice %186 {offsets = [0, 128], sizes = [8, 128], strides = [1, 1]} : vector<8x384xi1> to vector<8x128xi1>
    %191 = vector.extract_strided_slice %186 {offsets = [0, 256], sizes = [8, 128], strides = [1, 1]} : vector<8x384xi1> to vector<8x128xi1>
    %192 = arith.andi %190, %191 : vector<8x128xi1>
    %193 = arith.extui %192 : vector<8x128xi1> to vector<8x128xi32>
    %194 = arith.sitofp %193 : vector<8x128xi32> to vector<8x128xf32>
    %195 = arith.truncf %194 : vector<8x128xf32> to vector<8x128xbf16>
    %cst_73 = arith.constant dense<0.000000e+00> : vector<8x128xf32>
    %196 = tpu.matmul %0, %195, %cst_73 {dimension_numbers = #tpu.dot_dimension_numbers<[1], [0], [0], [1], [0, 0, 1, 1], [], []>} : vector<8x8xbf16>, vector<8x128xbf16>, vector<8x128xf32> -> vector<8x128xf32>
    %cst_74 = arith.constant 0.000000e+00 : f32
    %197 = vector.broadcast %cst_74 : f32 to vector<8x128xf32>
    %198 = arith.select %189, %196, %197 : vector<8x128xi1>, vector<8x128xf32>
    %cst_75 = arith.constant 1.000000e+00 : f32
    %199 = vector.broadcast %cst_75 : f32 to vector<8x128xf32>
    %200 = arith.subf %199, %117 : vector<8x128xf32>
    %cst_76 = arith.constant 2.500000e-01 : f32
    %201 = vector.broadcast %cst_76 : f32 to vector<8x128xf32>
    %202 = arith.mulf %201, %200 : vector<8x128xf32>
    %203 = arith.mulf %113, %202 : vector<8x128xf32>
    %204 = arith.addf %203, %198 : vector<8x128xf32>
    %cst_77 = arith.constant 5.000000e-01 : f32
    %205 = vector.broadcast %cst_77 : f32 to vector<8x128xf32>
    %206 = arith.cmpf ogt, %204, %205 : vector<8x128xf32>
    %207 = arith.extui %206 : vector<8x128xi1> to vector<8x128xi32>
    %208 = arith.sitofp %207 : vector<8x128xi32> to vector<8x128xf32>
    %209 = arith.extui %206 : vector<8x128xi1> to vector<8x128xi32>
    %210 = arith.sitofp %209 : vector<8x128xi32> to vector<8x128xf32>
    %211 = arith.truncf %210 : vector<8x128xf32> to vector<8x128xbf16>
    %cst_78 = arith.constant dense<0.000000e+00> : vector<8x128xf32>
    %212 = tpu.matmul %211, %3, %cst_78 {dimension_numbers = #tpu.dot_dimension_numbers<[1], [0], [0], [1], [0, 0, 1, 1], [], []>} : vector<8x128xbf16>, vector<128x128xbf16>, vector<8x128xf32> -> vector<8x128xf32>
    %213 = vector.broadcast %4 : vector<1x128xf32> to vector<8x128xf32>
    %214 = arith.addf %212, %213 : vector<8x128xf32>
    %215 = arith.addf %162, %214 : vector<8x128xf32>
    %cst_79 = arith.constant 1.000000e+00 : f32
    %216 = vector.broadcast %cst_79 : f32 to vector<8x128xf32>
    %217 = arith.subf %216, %134 : vector<8x128xf32>
    %cst_80 = arith.constant 2.500000e-01 : f32
    %218 = vector.broadcast %cst_80 : f32 to vector<8x128xf32>
    %219 = arith.mulf %218, %217 : vector<8x128xf32>
    %220 = arith.mulf %130, %219 : vector<8x128xf32>
    %221 = arith.addf %220, %215 : vector<8x128xf32>
    %cst_81 = arith.constant 5.000000e-01 : f32
    %222 = vector.broadcast %cst_81 : f32 to vector<8x128xf32>
    %223 = arith.cmpf ogt, %221, %222 : vector<8x128xf32>
    %224 = arith.extui %223 : vector<8x128xi1> to vector<8x128xi32>
    %225 = arith.sitofp %224 : vector<8x128xi32> to vector<8x128xf32>
    %226 = arith.extui %223 : vector<8x128xi1> to vector<8x128xi32>
    %227 = arith.sitofp %226 : vector<8x128xi32> to vector<8x128xf32>
    %228 = arith.truncf %227 : vector<8x128xf32> to vector<8x128xbf16>
    %cst_82 = arith.constant dense<0.000000e+00> : vector<8x128xf32>
    %229 = tpu.matmul %228, %5, %cst_82 {dimension_numbers = #tpu.dot_dimension_numbers<[1], [0], [0], [1], [0, 0, 1, 1], [], []>} : vector<8x128xbf16>, vector<128x128xbf16>, vector<8x128xf32> -> vector<8x128xf32>
    %230 = vector.broadcast %6 : vector<1x128xf32> to vector<8x128xf32>
    %231 = arith.addf %229, %230 : vector<8x128xf32>
    %cst_83 = arith.constant 1.000000e+00 : f32
    %232 = vector.broadcast %cst_83 : f32 to vector<8x128xf32>
    %233 = arith.subf %232, %150 : vector<8x128xf32>
    %cst_84 = arith.constant 2.500000e-01 : f32
    %234 = vector.broadcast %cst_84 : f32 to vector<8x128xf32>
    %235 = arith.mulf %234, %233 : vector<8x128xf32>
    %236 = arith.mulf %146, %235 : vector<8x128xf32>
    %237 = arith.addf %236, %231 : vector<8x128xf32>
    %cst_85 = arith.constant 5.000000e-01 : f32
    %238 = vector.broadcast %cst_85 : f32 to vector<8x128xf32>
    %239 = arith.cmpf ogt, %237, %238 : vector<8x128xf32>
    %240 = arith.extui %239 : vector<8x128xi1> to vector<8x128xi32>
    %241 = arith.sitofp %240 : vector<8x128xi32> to vector<8x128xf32>
    %242 = arith.extui %239 : vector<8x128xi1> to vector<8x128xi32>
    %243 = arith.sitofp %242 : vector<8x128xi32> to vector<8x128xf32>
    %244 = arith.truncf %243 : vector<8x128xf32> to vector<8x128xbf16>
    %cst_86 = arith.constant dense<0.000000e+00> : vector<8x128xf32>
    %245 = tpu.matmul %244, %7, %cst_86 {dimension_numbers = #tpu.dot_dimension_numbers<[1], [0], [0], [1], [0, 0, 1, 1], [], []>} : vector<8x128xbf16>, vector<128x128xbf16>, vector<8x128xf32> -> vector<8x128xf32>
    %246 = vector.broadcast %8 : vector<1x128xf32> to vector<8x128xf32>
    %247 = arith.addf %245, %246 : vector<8x128xf32>
    %248 = arith.addf %215, %247 : vector<8x128xf32>
    %c2_87 = arith.constant 2 : index
    %c0_88 = arith.constant 0 : index
    %c0_89 = arith.constant 0 : index
    %c0_90 = arith.constant 0 : index
    %249 = vector.load %arg11[%c2_87, %c0_88, %c0_89, %c0_90] : memref<4x1x8x128xf32, #tpu.memory_space<vmem>>, vector<1x1x8x128xf32>
    %250 = vector.shape_cast %249 : vector<1x1x8x128xf32> to vector<8x128xf32>
    %251 = vector.shape_cast %248 : vector<8x128xf32> to vector<1x1x8x128xf32>
    tpu.vector_store %arg11[%c2_87, %c0_88, %c0_89, %c0_90], %251 {strides = array<i32>} : memref<4x1x8x128xf32, #tpu.memory_space<vmem>>, vector<1x1x8x128xf32>,
    %c3 = arith.constant 3 : index
    %c0_91 = arith.constant 0 : index
    %c0_92 = arith.constant 0 : index
    %c0_93 = arith.constant 0 : index
    %252 = vector.load %arg1[%c3, %c0_91, %c0_92, %c0_93] : memref<4x1x8x128xf32, #tpu.memory_space<vmem>>, vector<1x1x8x128xf32>
    %253 = vector.shape_cast %252 : vector<1x1x8x128xf32> to vector<8x128xf32>
    %cst_94 = arith.constant 1.000000e+00 : f32
    %254 = vector.broadcast %cst_94 : f32 to vector<8x128xf32>
    %255 = arith.subf %254, %172 : vector<8x128xf32>
    %cst_95 = arith.constant 2.500000e-01 : f32
    %256 = vector.broadcast %cst_95 : f32 to vector<8x128xf32>
    %257 = arith.mulf %256, %255 : vector<8x128xf32>
    %258 = arith.mulf %168, %257 : vector<8x128xf32>
    %259 = arith.addf %258, %253 : vector<8x128xf32>
    %cst_96 = arith.constant 5.000000e-01 : f32
    %260 = vector.broadcast %cst_96 : f32 to vector<8x128xf32>
    %261 = arith.cmpf ogt, %259, %260 : vector<8x128xf32>
    %262 = arith.extui %261 : vector<8x128xi1> to vector<8x128xi32>
    %263 = arith.sitofp %262 : vector<8x128xi32> to vector<8x128xf32>
    %264 = arith.truncf %263 : vector<8x128xf32> to vector<8x128xbf16>
    %cst_97 = arith.constant dense<0.000000e+00> : vector<8x384xf32>
    %265 = tpu.matmul %264, %1, %cst_97 {dimension_numbers = #tpu.dot_dimension_numbers<[1], [0], [0], [1], [0, 0, 1, 1], [], []>} : vector<8x128xbf16>, vector<128x384xbf16>, vector<8x384xf32> -> vector<8x384xf32>
    %266 = vector.broadcast %2 : vector<1x384xf32> to vector<8x384xf32>
    %267 = arith.addf %265, %266 : vector<8x384xf32>
    %cst_98 = arith.constant 1.000000e+00 : f32
    %268 = vector.broadcast %cst_98 : f32 to vector<8x384xf32>
    %269 = arith.subf %268, %188 : vector<8x384xf32>
    %cst_99 = arith.constant 2.500000e-01 : f32
    %270 = vector.broadcast %cst_99 : f32 to vector<8x384xf32>
    %271 = arith.mulf %270, %269 : vector<8x384xf32>
    %272 = arith.mulf %184, %271 : vector<8x384xf32>
    %273 = arith.addf %272, %267 : vector<8x384xf32>
    %cst_100 = arith.constant 5.000000e-01 : f32
    %274 = vector.broadcast %cst_100 : f32 to vector<8x384xf32>
    %275 = arith.cmpf ogt, %273, %274 : vector<8x384xf32>
    %276 = vector.extract_strided_slice %275 {offsets = [0, 0], sizes = [8, 128], strides = [1, 1]} : vector<8x384xi1> to vector<8x128xi1>
    %277 = vector.extract_strided_slice %275 {offsets = [0, 128], sizes = [8, 128], strides = [1, 1]} : vector<8x384xi1> to vector<8x128xi1>
    %278 = vector.extract_strided_slice %275 {offsets = [0, 256], sizes = [8, 128], strides = [1, 1]} : vector<8x384xi1> to vector<8x128xi1>
    %279 = arith.andi %277, %278 : vector<8x128xi1>
    %280 = arith.extui %279 : vector<8x128xi1> to vector<8x128xi32>
    %281 = arith.sitofp %280 : vector<8x128xi32> to vector<8x128xf32>
    %282 = arith.truncf %281 : vector<8x128xf32> to vector<8x128xbf16>
    %cst_101 = arith.constant dense<0.000000e+00> : vector<8x128xf32>
    %283 = tpu.matmul %0, %282, %cst_101 {dimension_numbers = #tpu.dot_dimension_numbers<[1], [0], [0], [1], [0, 0, 1, 1], [], []>} : vector<8x8xbf16>, vector<8x128xbf16>, vector<8x128xf32> -> vector<8x128xf32>
    %cst_102 = arith.constant 0.000000e+00 : f32
    %284 = vector.broadcast %cst_102 : f32 to vector<8x128xf32>
    %285 = arith.select %276, %283, %284 : vector<8x128xi1>, vector<8x128xf32>
    %cst_103 = arith.constant 1.000000e+00 : f32
    %286 = vector.broadcast %cst_103 : f32 to vector<8x128xf32>
    %287 = arith.subf %286, %208 : vector<8x128xf32>
    %cst_104 = arith.constant 2.500000e-01 : f32
    %288 = vector.broadcast %cst_104 : f32 to vector<8x128xf32>
    %289 = arith.mulf %288, %287 : vector<8x128xf32>
    %290 = arith.mulf %204, %289 : vector<8x128xf32>
    %291 = arith.addf %290, %285 : vector<8x128xf32>
    %cst_105 = arith.constant 5.000000e-01 : f32
    %292 = vector.broadcast %cst_105 : f32 to vector<8x128xf32>
    %293 = arith.cmpf ogt, %291, %292 : vector<8x128xf32>
    %294 = arith.extui %293 : vector<8x128xi1> to vector<8x128xi32>
    %295 = arith.sitofp %294 : vector<8x128xi32> to vector<8x128xf32>
    %296 = arith.truncf %295 : vector<8x128xf32> to vector<8x128xbf16>
    %cst_106 = arith.constant dense<0.000000e+00> : vector<8x128xf32>
    %297 = tpu.matmul %296, %3, %cst_106 {dimension_numbers = #tpu.dot_dimension_numbers<[1], [0], [0], [1], [0, 0, 1, 1], [], []>} : vector<8x128xbf16>, vector<128x128xbf16>, vector<8x128xf32> -> vector<8x128xf32>
    %298 = vector.broadcast %4 : vector<1x128xf32> to vector<8x128xf32>
    %299 = arith.addf %297, %298 : vector<8x128xf32>
    %300 = arith.addf %253, %299 : vector<8x128xf32>
    %cst_107 = arith.constant 1.000000e+00 : f32
    %301 = vector.broadcast %cst_107 : f32 to vector<8x128xf32>
    %302 = arith.subf %301, %225 : vector<8x128xf32>
    %cst_108 = arith.constant 2.500000e-01 : f32
    %303 = vector.broadcast %cst_108 : f32 to vector<8x128xf32>
    %304 = arith.mulf %303, %302 : vector<8x128xf32>
    %305 = arith.mulf %221, %304 : vector<8x128xf32>
    %306 = arith.addf %305, %300 : vector<8x128xf32>
    %cst_109 = arith.constant 5.000000e-01 : f32
    %307 = vector.broadcast %cst_109 : f32 to vector<8x128xf32>
    %308 = arith.cmpf ogt, %306, %307 : vector<8x128xf32>
    %309 = arith.extui %308 : vector<8x128xi1> to vector<8x128xi32>
    %310 = arith.sitofp %309 : vector<8x128xi32> to vector<8x128xf32>
    %311 = arith.truncf %310 : vector<8x128xf32> to vector<8x128xbf16>
    %cst_110 = arith.constant dense<0.000000e+00> : vector<8x128xf32>
    %312 = tpu.matmul %311, %5, %cst_110 {dimension_numbers = #tpu.dot_dimension_numbers<[1], [0], [0], [1], [0, 0, 1, 1], [], []>} : vector<8x128xbf16>, vector<128x128xbf16>, vector<8x128xf32> -> vector<8x128xf32>
    %313 = vector.broadcast %6 : vector<1x128xf32> to vector<8x128xf32>
    %314 = arith.addf %312, %313 : vector<8x128xf32>
    %cst_111 = arith.constant 1.000000e+00 : f32
    %315 = vector.broadcast %cst_111 : f32 to vector<8x128xf32>
    %316 = arith.subf %315, %241 : vector<8x128xf32>
    %cst_112 = arith.constant 2.500000e-01 : f32
    %317 = vector.broadcast %cst_112 : f32 to vector<8x128xf32>
    %318 = arith.mulf %317, %316 : vector<8x128xf32>
    %319 = arith.mulf %237, %318 : vector<8x128xf32>
    %320 = arith.addf %319, %314 : vector<8x128xf32>
    %cst_113 = arith.constant 5.000000e-01 : f32
    %321 = vector.broadcast %cst_113 : f32 to vector<8x128xf32>
    %322 = arith.cmpf ogt, %320, %321 : vector<8x128xf32>
    %323 = arith.extui %322 : vector<8x128xi1> to vector<8x128xi32>
    %324 = arith.sitofp %323 : vector<8x128xi32> to vector<8x128xf32>
    %325 = arith.truncf %324 : vector<8x128xf32> to vector<8x128xbf16>
    %cst_114 = arith.constant dense<0.000000e+00> : vector<8x128xf32>
    %326 = tpu.matmul %325, %7, %cst_114 {dimension_numbers = #tpu.dot_dimension_numbers<[1], [0], [0], [1], [0, 0, 1, 1], [], []>} : vector<8x128xbf16>, vector<128x128xbf16>, vector<8x128xf32> -> vector<8x128xf32>
    %327 = vector.broadcast %8 : vector<1x128xf32> to vector<8x128xf32>
    %328 = arith.addf %326, %327 : vector<8x128xf32>
    %329 = arith.addf %300, %328 : vector<8x128xf32>
    %c3_115 = arith.constant 3 : index
    %c0_116 = arith.constant 0 : index
    %c0_117 = arith.constant 0 : index
    %c0_118 = arith.constant 0 : index
    %330 = vector.load %arg11[%c3_115, %c0_116, %c0_117, %c0_118] : memref<4x1x8x128xf32, #tpu.memory_space<vmem>>, vector<1x1x8x128xf32>
    %331 = vector.shape_cast %330 : vector<1x1x8x128xf32> to vector<8x128xf32>
    %332 = vector.shape_cast %329 : vector<8x128xf32> to vector<1x1x8x128xf32>
    tpu.vector_store %arg11[%c3_115, %c0_116, %c0_117, %c0_118], %332 {strides = array<i32>} : memref<4x1x8x128xf32, #tpu.memory_space<vmem>>, vector<1x1x8x128xf32>,
    return
  }
  func.func @transform_0(%arg0: i32) -> (i32, i32, i32, i32) {
    %c0_i32 = arith.constant 0 : i32
    %c0_i32_0 = arith.constant 0 : i32
    %c0_i32_1 = arith.constant 0 : i32
    %c0_i32_2 = arith.constant 0 : i32
    return %c0_i32, %arg0, %c0_i32_0, %c0_i32_1 : i32, i32, i32, i32
  }
  func.func @transform_1(%arg0: i32) -> (i32, i32) {
    %c0_i32 = arith.constant 0 : i32
    %c0_i32_0 = arith.constant 0 : i32
    %c0_i32_1 = arith.constant 0 : i32
    return %c0_i32, %c0_i32_0 : i32, i32
  }
  func.func @transform_2(%arg0: i32) -> (i32, i32) {
    %c0_i32 = arith.constant 0 : i32
    %c0_i32_0 = arith.constant 0 : i32
    %c0_i32_1 = arith.constant 0 : i32
    return %c0_i32, %c0_i32_0 : i32, i32
  }
  func.func @transform_3(%arg0: i32) -> (i32, i32) {
    %c0_i32 = arith.constant 0 : i32
    %c0_i32_0 = arith.constant 0 : i32
    %c0_i32_1 = arith.constant 0 : i32
    return %c0_i32, %c0_i32_0 : i32, i32
  }
  func.func @transform_4(%arg0: i32) -> (i32, i32) {
    %c0_i32 = arith.constant 0 : i32
    %c0_i32_0 = arith.constant 0 : i32
    %c0_i32_1 = arith.constant 0 : i32
    return %c0_i32, %c0_i32_0 : i32, i32
  }
  func.func @transform_5(%arg0: i32) -> (i32, i32) {
    %c0_i32 = arith.constant 0 : i32
    %c0_i32_0 = arith.constant 0 : i32
    %c0_i32_1 = arith.constant 0 : i32
    return %c0_i32, %c0_i32_0 : i32, i32
  }
  func.func @transform_6(%arg0: i32) -> (i32, i32) {
    %c0_i32 = arith.constant 0 : i32
    %c0_i32_0 = arith.constant 0 : i32
    %c0_i32_1 = arith.constant 0 : i32
    return %c0_i32, %c0_i32_0 : i32, i32
  }
  func.func @transform_7(%arg0: i32) -> (i32, i32) {
    %c0_i32 = arith.constant 0 : i32
    %c0_i32_0 = arith.constant 0 : i32
    %c0_i32_1 = arith.constant 0 : i32
    return %c0_i32, %c0_i32_0 : i32, i32
  }
  func.func @transform_8(%arg0: i32) -> (i32, i32) {
    %c0_i32 = arith.constant 0 : i32
    %c0_i32_0 = arith.constant 0 : i32
    %c0_i32_1 = arith.constant 0 : i32
    return %c0_i32, %c0_i32_0 : i32, i32
  }
  func.func @transform_9(%arg0: i32) -> (i32, i32) {
    %c0_i32 = arith.constant 0 : i32
    %c0_i32_0 = arith.constant 0 : i32
    %c0_i32_1 = arith.constant 0 : i32
    return %c0_i32, %c0_i32_0 : i32, i32
  }
  func.func @transform_10(%arg0: i32) -> (i32, i32, i32, i32) {
    %c0_i32 = arith.constant 0 : i32
    %c0_i32_0 = arith.constant 0 : i32
    %c0_i32_1 = arith.constant 0 : i32
    %c0_i32_2 = arith.constant 0 : i32
    return %c0_i32, %arg0, %c0_i32_0, %c0_i32_1 : i32, i32, i32, i32
  }
}

</mosaic_0001>

<bundles_post_ra>
// kernel: tpu_custom_call.1
= control target key start
LH: loop header
LB: loop body
LE: loop exit
PB: predicated region body
PF: predicated region fallthrough
CT: control target
= control target key end

     0   :  { %s4300_s0 = inlined_call_operand.hbm [shape: f32[4,2,8,128], index: 0, kind: input, shape index: {}]   ;;  %s4301_s1 = inlined_call_operand.hbm [shape: bf16[8,8], index: 1, kind: input, shape index: {}]   ;;  %s4302_s2 = inlined_call_operand.hbm [shape: bf16[128,384], index: 2, kind: input, shape index: {}]   ;;  %s4303_s3 = inlined_call_operand.vmem [shape: f32[1,384], index: 3, kind: input, shape index: {}]   ;;  %s4304_s4 = inlined_call_operand.hbm [shape: bf16[128,128], index: 4, kind: input, shape index: {}]   ;;  %s4305_s5 = inlined_call_operand.vmem [shape: f32[1,128], index: 5, kind: input, shape index: {}]   ;;  %s4306_s6 = inlined_call_operand.hbm [shape: bf16[128,128], index: 6, kind: input, shape index: {}]   ;;  %s4307_s7 = inlined_call_operand.vmem [shape: f32[1,128], index: 7, kind: input, shape index: {}]   ;;  %s4308_s8 = inlined_call_operand.hbm [shape: bf16[128,128], index: 8, kind: input, shape index: {}]   ;;  %s4309_s9 = inlined_call_operand.vmem [shape: f32[1,128], index: 9, kind: input, shape index: {}]   ;;  %s4310_s10 = inlined_call_operand.hbm [shape: f32[4,2,8,128], index: 10, kind: output, shape index: {}]  }
   0x1   :  { %4342 = sst [smem:[#allocation33_spill]] %s4301_s1 }
   0x2   :  { %4343 = sst [smem:[#allocation34_spill]] %s4302_s2 }
   0x3   :  { %4344 = sst [smem:[#allocation35_spill]] %s4304_s4 }
   0x4   :  { %4345 = sst [smem:[#allocation36_spill]] %s4306_s6 }
   0x5   :  { %15 = vsyncpa [#allocation3], 0 }
   0x6   :  { %17 = vsyncpa [#allocation3 + $0x1], 0 }
   0x7   :  { %18 = vsyncpa [#allocation6], 0 }
   0x8   :  { %19 = vsyncpa [#allocation9], 0 }
   0x9   :  { %20 = vsyncpa [#allocation12], 0 }
   0xa   :  { %21 = vsyncpa [#allocation4], 0 }
   0xb   :  { %23 = vsyncpa [#allocation4 + $0x1], 0  ;;  %s3343_s13 = smov 0   ;;  %s3345_s14 = smov 0  }
   0xc   :  { %s3347_s15 = smov 0   ;;  %s3349_s16 = smov 0  }
   0xd LB: > { %s3364_s17 = sadd.s32 4294967295, %s3265_s16   ;;  %s2175_s18 = sadd.s32 4294967294, %s3265_s16   ;;  %s3265_s16 = sphi %s3349_s16, %s4415_s16   ;;  %s3261_s15 = sphi %s3347_s15, %s4414_s15   ;;  %s3257_s14 = sphi %s3345_s14, %s4413_s14   ;;  %s3253_s13 = sphi %s3343_s13, %s4412_s13  }
   0xe   : > { %p49_p0 = scmp.ne.s32.totalorder %s3257_s14, %s3253_s13  ;;  %p4311_p1 = scmp.eq.s32.totalorder %s3364_s17, 0 }
   0xf   : > { %p268_p3 = scmp.eq.s32.totalorder %s2175_s18, 1  ;;  %p2176_p5 = scmp.ge.s32.totalorder %s3265_s16, 1 }
  0x10   : > { %p3373_p4 = por %p4311_p1, %p49_p0  ;;  %p275_p7 = scmp.lt.s32.totalorder %s3265_s16, 3 }
  0x11   : > { %p3378_p6 = por %p268_p3, %p49_p0  ;;  %s3267_s22 = smov [#allocation5]  }
  0x12   : > { %s4346_s19 = scalar_select %p3373_p4, 1, 0 }
  0x13   : > { %s4347_s20 = scalar_select %p3378_p6, 1, 0 }
  0x14   : > { %p3383_p8 = pnand %p2176_p5, %p275_p7  ;;  %s288_s23 = sshll.u32 %s3267_s22, 4  ;;  %s289_s23 = int_to_ptr.vmem [resolvable:$true] %s288_s23 }
  0x15   : > { %s3268_s24 = smov [#allocation8]   ;;  %s3269_s27 = smov [#allocation7]  }
  0x16   : > { %s4348_s21 = scalar_select %p3383_p8, 1, 0 }
  0x17   : > { %p2847_p10 = pneg %p3383_p8  ;;  %s314_s25 = sshll.u32 %s3268_s24, 4  ;;  %s315_s25 = int_to_ptr.vmem [resolvable:$true] %s314_s25 }
  0x18   : > { %s298_s28 = sshll.u32 %s3269_s27, 4  ;;  %s3042_s30 = scalar_lea.vmem %s289_s23, 64  ;;  %s299_s28 = int_to_ptr.vmem [resolvable:$true] %s298_s28 }
  0x19   : > { %p3392_p11 = pnand %p2847_p10, %p4311_p1  ;;  %p3043_p13 = scmp.ne.s32.totalorder %s289_s23, %s3042_s30 }
  0x1a   : > { %p3050_p5 = scmp.lt.s32.totalorder %s289_s23, %s289_s23  ;;  %p3051_p7 = scmp.lt.s32.totalorder %s3042_s30, %s3042_s30 }
  0x1b   : > { %p3398_p12 = pneg %p3392_p11 }
  0x1c   : > { %p3052_p10 = por %p3051_p7, %p3050_p5 }
  0x1d   : > { %p3045_p0 = pnand %p3043_p13, %p3398_p12 }
  0x1f   : > { %p3046_p3 = pneg %p3045_p0 }
  0x21   : > { %p3053_p9 = pnand %p3052_p10, %p3046_p3 }
  0x23   : > { %3056 = shalt.err (!%p3053_p9)
}
  0x24   : > { %s4351_s1 = sld [smem:[#allocation33_spill]]  ;;  %s3068_s18 = scalar_lea.vmem %s315_s25, 1024 }
  0x25   : > { %p3069_p1 = scmp.ne.s32.totalorder %s315_s25, %s3068_s18  ;;  %p3076_p4 = scmp.lt.s32.totalorder %s315_s25, %s315_s25 }
  0x26   : > { %p3077_p13 = scmp.lt.s32.totalorder %s3068_s18, %s3068_s18 }
  0x27   : > { %p3071_p2 = pnand %p3069_p1, %p3398_p12 }
  0x28   : > { %p3078_p0 = por %p3077_p13, %p3076_p4 }
  0x29   : > { %p3072_p6 = pneg %p3071_p2 }
  0x2a   : > { %2850 = dma.hbm_to_vmem [thread:$0]  (!%p3392_p11), %s4351_s1, 64, %s289_s23, [#allocation6]  }
  0x2b   : > { %p3079_p8 = pnand %p3078_p0, %p3072_p6 }
  0x2d   : > { %3082 = shalt.err (!%p3079_p8)
}
  0x2e   : > { %s4314_s22 = smov 64   ;;  %s4316_s24 = smov 4  }
  0x2f   : > { %s4352_s4 = sld [smem:[#allocation35_spill]]  ;;  %s3094_s30 = scalar_lea.vmem %s299_s28, 3072 }
  0x30   : > { %p3095_p1 = scmp.ne.s32.totalorder %s299_s28, %s3094_s30  ;;  %p3102_p6 = scmp.lt.s32.totalorder %s299_s28, %s299_s28 }
  0x31   : > { %p3103_p8 = scmp.lt.s32.totalorder %s3094_s30, %s3094_s30 }
  0x32   : > { %p3097_p2 = pnand %p3095_p1, %p3398_p12 }
  0x33   : > { %p3104_p9 = por %p3103_p8, %p3102_p6 }
  0x34   : > { %p3098_p4 = pneg %p3097_p2 }
  0x35   : > { %2856 = dma.hbm_to_vmem [thread:$0]  (!%p3392_p11), %s4352_s4, 1024, %s315_s25, [#allocation9], %s4314_s22, %s4314_s22, %s4316_s24  }
  0x36   : > { %p3105_p3 = pnand %p3104_p9, %p3098_p4 }
  0x38   : > { %3108 = shalt.err (!%p3105_p3)
}
  0x39   : > { %s3272_s11 = smov 192   ;;  %s3273_s12 = smov 12  }
  0x3a   : > { %s4353_s2 = sld [smem:[#allocation34_spill]]  ;;  %s3274_s25 = smov [#allocation10]  }
  0x3b   : > { %s330_s27 = sshll.u32 %s3274_s25, 4  ;;  %s3275_s23 = smov [#allocation11]   ;;  %s331_s27 = int_to_ptr.vmem [resolvable:$true] %s330_s27 }
  0x3c   : > { %s346_s22 = sshll.u32 %s3275_s23, 4  ;;  %s3120_s24 = scalar_lea.vmem %s331_s27, 1024  ;;  %s347_s22 = int_to_ptr.vmem [resolvable:$true] %s346_s22 }
  0x3d   : > { %p3121_p5 = scmp.ne.s32.totalorder %s331_s27, %s3120_s24  ;;  %p3128_p13 = scmp.lt.s32.totalorder %s331_s27, %s331_s27 }
  0x3e   : > { %p3129_p0 = scmp.lt.s32.totalorder %s3120_s24, %s3120_s24 }
  0x3f   : > { %p3123_p7 = pnand %p3121_p5, %p3398_p12 }
  0x40   : > { %2853 = dma.hbm_to_vmem [thread:$0]  (!%p3392_p11), %s4353_s2, 3072, %s299_s28, [#allocation6], %s3272_s11, %s3272_s11, %s3273_s12  }
  0x41   : > { %p3124_p10 = pneg %p3123_p7  ;;  %p3130_p1 = por %p3129_p0, %p3128_p13 }
  0x43   : > { %p3131_p2 = pnand %p3130_p1, %p3124_p10 }
  0x45   : > { %3134 = shalt.err (!%p3131_p2)
}
  0x46   : > { %s4354_s30 = smov 4   ;;  %s4355_s1 = smov 64  }
  0x47   : > { %s4356_s6 = sld [smem:[#allocation36_spill]]  ;;  %s3146_s12 = scalar_lea.vmem %s347_s22, 1024 }
  0x48   : > { %p3147_p4 = scmp.ne.s32.totalorder %s347_s22, %s3146_s12  ;;  %p3154_p9 = scmp.lt.s32.totalorder %s347_s22, %s347_s22 }
  0x49   : > { %p3155_p3 = scmp.lt.s32.totalorder %s3146_s12, %s3146_s12 }
  0x4a   : > { %p3149_p6 = pnand %p3147_p4, %p3398_p12 }
  0x4b   : > { %p3156_p5 = por %p3155_p3, %p3154_p9 }
  0x4c   : > { %p3150_p8 = pneg %p3149_p6 }
  0x4d   : > { %2859 = dma.hbm_to_vmem [thread:$0]  (!%p3392_p11), %s4356_s6, 1024, %s331_s27, [#allocation9], %s4355_s1, %s4355_s1, %s4354_s30  }
  0x4e   : > { %p3157_p7 = pnand %p3156_p5, %p3150_p8 }
  0x50   : > { %3160 = shalt.err (!%p3157_p7)
}
  0x51   : > { %2862 = dma.hbm_to_vmem [thread:$0]  (!%p3392_p11), %s4308_s8, 1024, %s347_s22, [#allocation12], %s4355_s1, %s4355_s1, %s4354_s30  }
  0x52   : > { %s3447_s29 = sadd.s32 1, %s3265_s16   ;;  %s36_s25 = sadd.s32 1, %s3261_s15 }
  0x53   : > { %s33_s26 = ssub.s32 %s3265_s16, %s3447_s29  ;;  %p43_p10 = scmp.ne.s32.totalorder %s3261_s15, %s3257_s14 }
  0x54   : > { %p34_p12 = scmp.eq.s32.totalorder %s33_s26, 0  ;;  %p44_p13 = scmp.eq.s32.totalorder %s3265_s16, 0 }
  0x55   : > { %p2876_p0 = scmp.lt.s32.totalorder %s3265_s16, 2  ;;  %p4357_p2 = scmp.eq.s32.totalorder %s3364_s17, 1 }
  0x56   : > { %s3457_s27 = scalar_select %p34_p12, %s3261_s15, %s36_s25  }
  0x57   : > { %p45_p1 = por %p44_p13, %p43_p10  ;;  %p3461_p4 = por %p4357_p2, %p43_p10 }
  0x58   : > { %s363_s28 = sand.u32 1, %s3261_s15   ;;  %s2184_s11 = sshll.u32 %s3265_s16, 7 }
  0x59   : > { %s4358_s23 = scalar_select %p3461_p4, 1, 0 }
  0x5a   : > { %s2183_s22 = sshll.u32 %s363_s28, 5  ;;  %s3470_s12 = scalar_lea.hbm %s4300_s0, %s2184_s11 }
  0x5b   : > { %s367_s24 = scalar_lea.vmem [#allocation2], %s2183_s22  ;;  %p3472_p11 = pnand %p2876_p0, %p45_p1 }
  0x5c   : > { %s373_s18 = sshll.u32 %s367_s24, 4  ;;  %s3478_s25 = scalar_lea.sflag [#allocation3], %s363_s28  ;;  %s3476_s18 = int_to_ptr.vmem [resolvable:$true] %s373_s18 }
  0x5d   : > { %s3161_s2 = scalar_lea.hbm %s3470_s12, 512  ;;  %p3163_p8 = pneg %p3472_p11 }
  0x5e   : > { %p3162_p6 = scmp.ne.s32.totalorder %s3470_s12, %s3161_s2  ;;  %s3166_s22 = scalar_lea.hbm %s4300_s0, 1024 }
  0x5f   : > { %p3167_p5 = scmp.lt.s32.totalorder %s3470_s12, %s4300_s0  ;;  %p3168_p7 = scmp.lt.s32.totalorder %s3166_s22, %s3161_s2 }
  0x60   : > { %p3164_p9 = pnand %p3163_p8, %p3162_p6 }
  0x61   : > { %p3169_p12 = por %p3168_p7, %p3167_p5 }
  0x62   : > { %p3165_p3 = pneg %p3164_p9 }
  0x64   : > { %p3170_p10 = pnand %p3169_p12, %p3165_p3 }
  0x66   : > { %3173 = shalt.err (!%p3170_p10)
}
  0x67   : > { %s3174_s28 = scalar_lea.vmem %s3476_s18, 512  ;;  %s3276_s4 = smov [#allocation2]  }
  0x68   : > { %p3175_p13 = scmp.ne.s32.totalorder %s3476_s18, %s3174_s28  ;;  %s3179_s6 = sshll.u32 %s3276_s4, 4  ;;  %s3180_s6 = int_to_ptr.vmem [resolvable:$false] %s3179_s6 }
  0x69   : > { %s3181_s11 = scalar_lea.vmem %s3180_s6, 1024  ;;  %p3182_p2 = scmp.lt.s32.totalorder %s3476_s18, %s3180_s6 }
  0x6a   : > { %p3177_p0 = pnand %p3175_p13, %p3163_p8  ;;  %p3183_p6 = scmp.lt.s32.totalorder %s3181_s11, %s3174_s28 }
  0x6c   : > { %p3178_p1 = pneg %p3177_p0  ;;  %p3184_p9 = por %p3183_p6, %p3182_p2 }
  0x6e   : > { %p3185_p4 = pnand %p3184_p9, %p3178_p1 }
  0x70   : > { %3188 = shalt.err (!%p3185_p4)
}
  0x71   : > { %s3277_s2 = smov 256   ;;  %s3278_s30 = smov 128  }
  0x72   : > { %s3279_s22 = smov 8   ;;  %p4360_p8 = scmp.ne.s32.totalorder %s4348_s21, 0 }
  0x73   : > { %2866 = dma.hbm_to_vmem [thread:$0]  (!%p3472_p11), %s3470_s12, 512, %s3476_s18, %s3478_s25, %s3277_s2, %s3278_s30, %s3279_s22  }
  0x74   : > { %385 = sbr.rel (%p4360_p8) target bundleno = 3688 (0xe68), region = 60 }
  0x79   : > { %s3502_s4 = sand.u32 1, %s3257_s14   ;;  %p4361_p4 = scmp.ne.s32.totalorder %s4346_s19, 0 }
  0x7a   : > { %s2186_s6 = sshll.u32 %s3502_s4, 5  ;;  %s388_s1 = scalar_lea.sflag [#allocation3], %s3502_s4 }
  0x7b   : > { %s3508_s24 = scalar_lea.vmem [#allocation2], %s2186_s6 }
  0x7c   : > { %3232 = dma.done.wait (%p4361_p4), %s388_s1, 512  }
  0x7d   : > { %3234 = vsyncadd (%p4361_p4), %s388_s1, 4294966784  ;;  %p4362_p11 = scmp.eq.s32.totalorder %s3364_s17, 0 }
  0x7f   : > { %3236 = dma.done.wait (%p4362_p11), [#allocation6], 3136   ;;  %p4363_p3 = pmov %p4362_p11 }
  0x81   : > { %3238 = vsyncadd (%p4363_p3), [#allocation6], 4294964160  ;;  %p4364_p5 = pmov %p4363_p3 }
  0x82   : > { %p4365_p7 = pmov %p4363_p3 }
  0x83   : > { %3240 = dma.done.wait (%p4364_p5), [#allocation9], 2048  }
  0x84   : > { %3242 = vsyncadd (%p4365_p7), [#allocation9], 4294965248  ;;  %p4366_p12 = pmov %p4363_p3 }
  0x85   : > { %p4367_p10 = pmov %p4363_p3 }
  0x86   : > { %3244 = dma.done.wait (%p4366_p12), [#allocation12], 1024  }
  0x87   : > { %3246 = vsyncadd (%p4367_p10), [#allocation12], 4294966272  ;;  %v4326_v0 = vmov 0.0   ;;  %vm3281_vm0 = vmmov 0   ;;  %v4319_v1 = vmov 0   ;;  %v3582_v19 = vld [vmem:[%s3508_s24] sm:$0xff]  ;;  %v540_v29 = vlaneseq }
  0x88   : > { %2479 = vmatprep.subr.bf16.mxu1 %v4326_v0  ;;  %2495 = vmatprep.mubr.msk.bf16.mxu1 %vm3281_vm0, %v4326_v0  ;;  %v3530_v2 = vld [vmem:[#allocation7 + $0xac] ss:$12 sps:$4 sm:$0xff]   ;;  %v3532_v3 = vld [vmem:[#allocation7 + $0xb0] ss:$12 sps:$4 sm:$0xff]   ;;  %v3535_v4 = vld [vmem:[#allocation7 + $0xa8] ss:$12 sps:$4 sm:$0xff]  }
  0x89   : > { %715 = vmatprep.mubr.bf16.mxu0 %v4319_v1  ;;  %683 = vmatprep.subr.bf16.mxu0 %v3530_v2  ;;  %v3538_v5 = vld [vmem:[#allocation7 + $0x94] ss:$12 sps:$4 sm:$0xff]   ;;  %v3542_v6 = vld [vmem:[#allocation7 + $0x98] ss:$12 sps:$4 sm:$0xff]   ;;  %v3544_v7 = vld [vmem:[#allocation7 + $0x90] ss:$12 sps:$4 sm:$0xff]  }
  0x8a   : > { %2480 = vmatpush3.bf16.msra.mxu1 %v3532_v3  ;;  %684 = vmatpush1.bf16.msra.mxu0 %v3535_v4  ;;  %v3547_v8 = vld [vmem:[#allocation7 + $0x7c] ss:$12 sps:$4 sm:$0xff]   ;;  %v3550_v9 = vld [vmem:[#allocation7 + $0x80] ss:$12 sps:$4 sm:$0xff]   ;;  %v3554_v10 = vld [vmem:[#allocation7 + $0x78] ss:$12 sps:$4 sm:$0xff]  }
  0x8b   : > { %2481 = vmatprep.subr.bf16.mxu1 %v4326_v0  ;;  %685 = vmatprep.subr.bf16.mxu0 %v3538_v5  ;;  %v3557_v11 = vld [vmem:[#allocation7 + $0x64] ss:$12 sps:$4 sm:$0xff]   ;;  %v3560_v12 = vld [vmem:[#allocation7 + $0x68] ss:$12 sps:$4 sm:$0xff]   ;;  %v3564_v13 = vld [vmem:[#allocation7 + $0x60] ss:$12 sps:$4 sm:$0xff]  }
  0x8c   : > { %v3567_v14 = vld [vmem:[#allocation7 + $0x4c] ss:$12 sps:$4 sm:$0xff]   ;;  %v3570_v15 = vld [vmem:[#allocation7 + $0x50] ss:$12 sps:$4 sm:$0xff]   ;;  %v3574_v16 = vld [vmem:[#allocation7 + $0x48] ss:$12 sps:$4 sm:$0xff]  }
  0x8d   : > { %v3577_v17 = vld [vmem:[#allocation7 + $0x34] ss:$12 sps:$4 sm:$0xff]   ;;  %v3579_v18 = vld [vmem:[#allocation7 + $0x38] ss:$12 sps:$4 sm:$0xff]   ;;  %v3585_v20 = vld [vmem:[#allocation7 + $0x30] ss:$12 sps:$4 sm:$0xff]  }
  0x8e   : > { %2482 = vmatpush3.bf16.msra.mxu1 %v3542_v6  ;;  %686 = vmatpush1.bf16.msra.mxu0 %v3544_v7  ;;  %4368 = vst [vmem:[#allocation19_spill] sm:$0xff] %v3577_v17  ;;  %4369 = vst [vmem:[#allocation20_spill] sm:$0xff] %v3579_v18  ;;  %v3587_v21 = vld [vmem:[#allocation7 + $0x1c] ss:$12 sps:$4 sm:$0xff]   ;;  %vm535_vm1 = vcmp.gt.f32.partialorder %v3582_v19, 0.5  ;;  %v3632_v30 = vshrl.u32 %v540_v29, 7 }
  0x8f   : > { %2483 = vmatprep.subr.bf16.mxu1 %v4326_v0  ;;  %687 = vmatprep.subr.bf16.mxu0 %v3547_v8  ;;  %4370 = vst [vmem:[#allocation21_spill] sm:$0xff] %v3585_v20  ;;  %4371 = vst [vmem:[#allocation22_spill] sm:$0xff] %v3587_v21  ;;  %v3593_v22 = vld [vmem:[#allocation7 + $0x20] ss:$12 sps:$4 sm:$0xff]   ;;  %v3595_v23 = vld [vmem:[#allocation7 + $0x18] ss:$12 sps:$4 sm:$0xff]  }
  0x90   : > { %4372 = vst [vmem:[#allocation23_spill] sm:$0xff] %v3595_v23  ;;  %v3598_v24 = vld [vmem:[#allocation7 + $0x4] ss:$12 sps:$4 sm:$0xff]   ;;  %vm3603_vm2 = vmpackc.low %vm535_vm1, %vm535_vm1  ;;  %v3610_v26 = vld [vmem:[#allocation7 + $0x8] ss:$12 sps:$4 sm:$0xff]   ;;  %v550_v31 = vsub.s32 2, %v3632_v30 }
  0x91   : > { %4373 = vst [vmem:[#allocation24_spill] sm:$0xff] %v3598_v24  ;;  %v3612_v27 = vld [vmem:[#allocation7] ss:$12 sps:$4 sm:$0xff]   ;;  %v4321_v28 = vmov 1.0|1.0   ;;  %v546_v33 = vsub.s32 1, %v3632_v30 }
  0x92   : > { %2484 = vmatpush3.bf16.msra.mxu1 %v3550_v9  ;;  %688 = vmatpush1.bf16.msra.mxu0 %v3554_v10  ;;  %4376 = vst [vmem:[#allocation25_spill] sm:$0xff] %v3612_v27  ;;  %v3638_v32 = vld [vmem:[%s4303_s3] sm:$0x7]  ;;  %vm781_vm6 = vcmask 1043456   ;;  %vm777_vm7 = vcmask 64512   ;;  %v3667_v59 = vld [vmem:[#allocation8 + $0x30] sm:$0xff]  }
  0x93   : > { %2485 = vmatprep.subr.bf16.mxu1 %v4326_v0  ;;  %689 = vmatprep.subr.bf16.mxu0 %v3557_v11  ;;  %v3642_v34 = vrot.slane %v3638_v32, %v550_v31  ;;  %v3645_v36 = vrot.slane %v3638_v32, %v546_v33  ;;  %v3659_v57 = vld [vmem:[#allocation5] sm:$0xf]  ;;  %v3673_v60 = vld [vmem:[#allocation8 + $0x28] sm:$0xff]   ;;  %v3677_v61 = vld [vmem:[#allocation8 + $0x20] sm:$0xff]   ;;  %s3902_s2 = scalar_lea.vmem [#allocation13], %s2186_s6  ;;  %s2324_s1 = sshll.u32 %s3364_s17, 7 }
  0x94   : > { %v3661_v58 = vld [vmem:[#allocation8 + $0x38] sm:$0xff]   ;;  %v3685_v63 = vld [vmem:[#allocation8 + $0x10] sm:$0xff]   ;;  %v3689_v25 = vld [vmem:[#allocation8 + $0x8] sm:$0xff]   ;;  %s2054_s6 = sshll.u32 %s3902_s2, 4  ;;  %s4256_s21 = scalar_lea.hbm %s4310_s10, %s2324_s1  ;;  %s4250_s6 = int_to_ptr.vmem [resolvable:$true] %s2054_s6 }
  0x95   : > { %v3681_v62 = vld [vmem:[#allocation8 + $0x18] sm:$0xff]   ;;  %v3694_v29 = vld [vmem:[#allocation8] sm:$0xff]   ;;  %v3701_v33 = vld [vmem:[#allocation10 + $0x30] sm:$0xff]   ;;  %s2042_s12 = scalar_lea.sflag [#allocation4], %s3502_s4  ;;  %s3189_s17 = scalar_lea.vmem %s4250_s6, 512 }
  0x96   : > { %2486 = vmatpush3.bf16.msra.mxu1 %v3560_v12  ;;  %690 = vmatpush1.bf16.msra.mxu0 %v3564_v13  ;;  %v3698_v31 = vld [vmem:[#allocation10 + $0x38] sm:$0xff]   ;;  %p3190_p13 = scmp.ne.s32.totalorder %s4250_s6, %s3189_s17  ;;  %p4409_p0 = scmp.ne.s32.totalorder %s4358_s23, 0 }
  0x97   : > { %2487 = vmatprep.subr.bf16.mxu1 %v4326_v0  ;;  %691 = vmatprep.subr.bf16.mxu0 %v3567_v14  ;;  %s3284_s18 = smov [#allocation13]  }
  0x98   : > { %p3191_p1 = pnand %p3190_p13, %p4409_p0  ;;  %s3193_s26 = sshll.u32 %s3284_s18, 4  ;;  %s3194_s26 = int_to_ptr.vmem [resolvable:$false] %s3193_s26 }
  0x99   : > { %s3195_s25 = scalar_lea.vmem %s3194_s26, 1024  ;;  %p3196_p6 = scmp.lt.s32.totalorder %s4250_s6, %s3194_s26 }
  0x9a   : > { %2488 = vmatpush3.bf16.msra.mxu1 %v3570_v15  ;;  %692 = vmatpush1.bf16.msra.mxu0 %v3574_v16  ;;  %p3192_p2 = pneg %p3191_p1  ;;  %p3197_p9 = scmp.lt.s32.totalorder %s3195_s25, %s3189_s17 }
  0x9b   : > { %2489 = vmatprep.subr.bf16.mxu1 %v4326_v0  ;;  %693 = vmatprep.subr.bf16.mxu0 %v3577_v17 }
  0x9c   : > { %p3198_p8 = por %p3197_p9, %p3196_p6 }
  0x9e   : > { %2490 = vmatpush3.bf16.msra.mxu1 %v3579_v18  ;;  %694 = vmatpush1.bf16.msra.mxu0 %v3585_v20  ;;  %p3199_p4 = pnand %p3198_p8, %p3192_p2 }
  0x9f   : > { %2491 = vmatprep.subr.bf16.mxu1 %v4326_v0  ;;  %695 = vmatprep.subr.bf16.mxu0 %v3587_v21 }
  0xa2   : > { %2492 = vmatpush3.bf16.msra.mxu1 %v3593_v22  ;;  %696 = vmatpush1.bf16.msra.mxu0 %v3595_v23 }
  0xa3   : > { %2493 = vmatprep.subr.bf16.mxu1 %v4326_v0  ;;  %697 = vmatprep.subr.bf16.mxu0 %v3598_v24 }
  0xa6   : > { %2494 = vmatpush3.bf16.msra.mxu1 %v3610_v26  ;;  %698 = vmatpush1.bf16.msra.mxu0 %v3612_v27 }
  0xa7   : > { %2499 = vmatprep.subr.bf16.mxu1 %v4326_v0  ;;  %2525 = vmatprep.subr.bf16.mxu0 %v4326_v0 }
  0xa9   : > { %2496 = vmatmul.mubr.msk.bf16.vlgmr.msra.gmra.mxu1 %vm3603_vm2, %v4321_v28  ;;  %2219 = vmatmul.mubr.msk.bf16.vlgmr.msra.gmra.mxu0 %vm3603_vm2, %v4321_v28 }
  0xaa   : > { %2501 = vmatprep.mubr.msk.bf16.mxu1 %vm3281_vm0, %v4326_v0  ;;  %2541 = vmatprep.mubr.msk.bf16.mxu0 %vm3281_vm0, %v4326_v0 }
  0xab   : > { %2526 = vmatpush3.bf16.msra.mxu0 %v3698_v31 }
  0xac   : > { %2527 = vmatprep.subr.bf16.mxu0 %v4326_v0 }
  0xaf   : > { %2528 = vmatpush3.bf16.msra.mxu0 %v3701_v33 }
  0xb0   : > { %2529 = vmatprep.subr.bf16.mxu0 %v4326_v0 }
 0x169   : > { %v758_v35 = vpop.f32.mrf.mxu1  ;;  %v3648_v38 = vpop.f32.mrf.mxu0 }
 0x16a   : > { %v759_v37 = vadd.f32 %v758_v35, %v3642_v34  ;;  %v3705_v35 = vld [vmem:[#allocation10 + $0x28] sm:$0xff]  }
 0x16b   : > { %v2497_v39 = vpop.f32.mrf.mxu1  ;;  %v719_v40 = vpop.f32.mrf.mxu0  ;;  %2530 = vmatpush3.bf16.msra.mxu0 %v3705_v35 }
 0x16c   : > { %vm766_vm3 = vcmp.gt.f32.partialorder %v759_v37, 0.5  ;;  %v720_v42 = vadd.f32 %v719_v40, %v3645_v36  ;;  %2531 = vmatprep.subr.bf16.mxu0 %v4326_v0  ;;  %v3713_v39 = vld [vmem:[#allocation10 + $0x18] sm:$0xff]   ;;  %v3717_v40 = vld [vmem:[#allocation10 + $0x10] sm:$0xff]  }
 0x16d   : > { %v2224_v41 = vsel %vm766_vm3, 1.0, %v4326_v0  ;;  %v761_v43 = vpop.f32.mrf.mxu1  ;;  %v721_v45 = vpop.f32.mrf.mxu0 }
 0x16e   : > { %v1216_v44 = vsub.f32 1.0, %v2224_v41  ;;  %vm765_vm4 = vcmp.gt.f32.partialorder %v720_v42, 0.5  ;;  %v3721_v41 = vld [vmem:[#allocation10 + $0x8] sm:$0xff]  }
 0x16f   : > { %v2498_v46 = vpop.f32.mrf.mxu1  ;;  %v2223_v48 = vsel %vm765_vm4, 1.0, %v4326_v0  ;;  %vm773_vm5 = vmand %vm765_vm4, %vm766_vm3  ;;  %v722_v49 = vpop.f32.mrf.mxu0 }
 0x170   : > { %v1219_v47 = vmul.f32 0.25, %v1216_v44  ;;  %v2225_v50 = vsel %vm773_vm5, 1.0, %v4326_v0  ;;  %v1215_v51 = vsub.f32 1.0, %v2223_v48 }
 0x171   : > { %v776_v53 = vpack.c.bf16 %v2225_v50, %v2225_v50 }
 0x172   : > { %v3654_v52 = vmul.f32 %v1219_v47, %v759_v37  ;;  %v1218_v54 = vmul.f32 0.25, %v1215_v51  ;;  %v3709_v37 = vld [vmem:[#allocation10 + $0x20] sm:$0xff]  }
 0x173   : > { %v783_v55 = vsel %vm781_vm6, %v776_v53, 0  ;;  %2532 = vmatpush3.bf16.msra.mxu0 %v3709_v37  ;;  %v3743_v51 = vld [vmem:[#allocation10] sm:$0xff]   ;;  %v2193_v53 = vsel %vm535_vm1, 1.0, %v4326_v0 }
 0x174   : > { %v3657_v56 = vmul.f32 %v1218_v54, %v720_v42  ;;  %2500 = vmatpush3.bf16.msra.mxu1 %v783_v55  ;;  %2533 = vmatprep.subr.bf16.mxu0 %v4326_v0  ;;  %v542_v42 = vsub.s32 0, %v3632_v30  ;;  %4377 = vst [vmem:[#allocation26_spill] sm:$0xff] %v3743_v51  ;;  %v1125_v54 = vsub.f32 1.0, %v2193_v53  ;;  %v3766_v53 = vld [vmem:[#allocation11 + $0x28] sm:$0xff]  }
 0x175   : > { %2505 = vmatprep.subr.bf16.mxu1 %v4326_v0 }
 0x176   : > { %v3728_v43 = vrot.slane %v3638_v32, %v542_v42  ;;  %v1126_v55 = vmul.f32 0.25, %v1125_v54  ;;  %v3770_v54 = vld [vmem:[#allocation11 + $0x20] sm:$0xff]  }
 0x177   : > { %2502 = vmatmul.mubr.msk.bf16.vlgmr.msra.gmra.mxu1 %vm777_vm7, %v3659_v57  ;;  %2534 = vmatpush3.bf16.msra.mxu0 %v3713_v39 }
 0x178   : > { %2506 = vmatpush3.bf16.msra.mxu1 %v3661_v58  ;;  %2521 = vmatprep.mubr.msk.bf16.mxu1 %vm3281_vm0, %v4326_v0  ;;  %v3732_v44 = vadd.f32 %v3648_v38, %v3728_v43  ;;  %v1127_v42 = vmul.f32 %v1126_v55, %v3582_v19  ;;  %v3774_v55 = vld [vmem:[#allocation11 + $0x18] sm:$0xff]  }
 0x179   : > { %2507 = vmatprep.subr.bf16.mxu1 %v4326_v0  ;;  %2535 = vmatprep.subr.bf16.mxu0 %v4326_v0  ;;  %4380 = vst [vmem:[#allocation29_spill] sm:$0xff] %v3774_v55 }
 0x17a   : > { %vm764_vm8 = vcmp.gt.f32.partialorder %v3732_v44, 0.5 }
 0x17b   : > { %2536 = vmatpush3.bf16.msra.mxu0 %v3717_v40 }
 0x17c   : > { %2508 = vmatpush3.bf16.msra.mxu1 %v3667_v59  ;;  %2537 = vmatprep.subr.bf16.mxu0 %v4326_v0 }
 0x17d   : > { %2509 = vmatprep.subr.bf16.mxu1 %v4326_v0 }
 0x17f   : > { %2538 = vmatpush3.bf16.msra.mxu0 %v3721_v41 }
 0x180   : > { %2510 = vmatpush3.bf16.msra.mxu1 %v3673_v60  ;;  %2539 = vmatprep.subr.bf16.mxu0 %v4326_v0 }
 0x181   : > { %2511 = vmatprep.subr.bf16.mxu1 %v4326_v0 }
 0x183   : > { %2540 = vmatpush3.bf16.msra.mxu0 %v3743_v51 }
 0x184   : > { %2512 = vmatpush3.bf16.msra.mxu1 %v3677_v61  ;;  %1133 = vmatprep.subr.bf16.mxu0 %v3530_v2 }
 0x185   : > { %2513 = vmatprep.subr.bf16.mxu1 %v4326_v0 }
 0x188   : > { %2514 = vmatpush3.bf16.msra.mxu1 %v3681_v62 }
 0x189   : > { %2515 = vmatprep.subr.bf16.mxu1 %v4326_v0 }
 0x18c   : > { %2516 = vmatpush3.bf16.msra.mxu1 %v3685_v63 }
 0x18d   : > { %2517 = vmatprep.subr.bf16.mxu1 %v4326_v0 }
 0x190   : > { %2518 = vmatpush3.bf16.msra.mxu1 %v3689_v25 }
 0x191   : > { %2519 = vmatprep.subr.bf16.mxu1 %v4326_v0 }
 0x194   : > { %2520 = vmatpush3.bf16.msra.mxu1 %v3694_v29 }
 0x195   : > { %2545 = vmatprep.subr.bf16.mxu1 %v4326_v0 }
 0x237   : > { %v819_v45 = vpop.f32.mrf.mxu1 }
 0x238   : > { %v825_v46 = vsel %vm764_vm8, %v819_v45, 0.0  ;;  %v3752_v45 = vld [vmem:[%s3508_s24 + $0x8] sm:$0xff] }
 0x239   : > { %vm826_vm9 = vcmp.gt.f32.partialorder %v825_v46, 0.5  ;;  %v2503_v47 = vpop.f32.mrf.mxu1  ;;  %4378 = vst [vmem:[#allocation27_spill] sm:$0xff] %v3752_v45 }
 0x23a   : > { %v2227_v48 = vsel %vm826_vm9, 1.0, %v4326_v0  ;;  %vm2237_vm10 = vmpackc.low %vm826_vm9, %vm826_vm9  ;;  %v1128_v47 = vadd.f32 %v3752_v45, %v1127_v42  ;;  %v3778_v42 = vld [vmem:[#allocation11 + $0x10] sm:$0xff]  }
 0x23b   : > { %v1283_v30 = vsub.f32 1.0, %v2227_v48  ;;  %v822_v49 = vpop.f32.mrf.mxu1  ;;  %2522 = vmatmul.mubr.msk.bf16.vlgmr.msra.gmra.mxu1 %vm2237_vm10, %v4321_v28  ;;  %4381 = vst [vmem:[#allocation30_spill] sm:$0xff] %v3778_v42 }
 0x23c   : > { %2561 = vmatprep.mubr.msk.bf16.mxu1 %vm3281_vm0, %v4326_v0  ;;  %vm1129_vm11 = vcmp.gt.f32.partialorder %v1128_v47, 0.5 }
 0x23d   : > { %v1284_v32 = vmul.f32 0.25, %v1283_v30  ;;  %v2504_v38 = vpop.f32.mrf.mxu1  ;;  %v3757_v30 = vld [vmem:[#allocation11 + $0x38] sm:$0xff]   ;;  %vm3819_vm14 = vmpackc.low %vm1129_vm11, %vm1129_vm11 }
 0x23e   : > { %2546 = vmatpush3.bf16.msra.mxu1 %v3757_v30 }
 0x23f   : > { %v3741_v50 = vmul.f32 %v1284_v32, %v825_v46  ;;  %v2264_v46 = vsel %vm1129_vm11, 1.0, %v4326_v0  ;;  %v3760_v32 = vld [vmem:[#allocation11 + $0x30] sm:$0xff]   ;;  %2547 = vmatprep.subr.bf16.mxu1 %v4326_v0 }
 0x240   : > { %v1433_v48 = vsub.f32 1.0, %v2264_v46  ;;  %v3782_v46 = vld [vmem:[#allocation11 + $0x8] sm:$0xff]  }
 0x241   : > { %4382 = vst [vmem:[#allocation31_spill] sm:$0xff] %v3782_v46 }
 0x242   : > { %v1434_v49 = vmul.f32 0.25, %v1433_v48  ;;  %2548 = vmatpush3.bf16.msra.mxu1 %v3760_v32  ;;  %v3790_v48 = vld [vmem:[%s4305_s5] ss:$0 sm:$0xff] }
 0x243   : > { %2549 = vmatprep.subr.bf16.mxu1 %v4326_v0 }
 0x244   : > { %v3763_v38 = vmul.f32 %v1434_v49, %v1128_v47 }
 0x246   : > { %4379 = vst [vmem:[#allocation28_spill] sm:$0xff] %v3763_v38  ;;  %2550 = vmatpush3.bf16.msra.mxu1 %v3766_v53 }
 0x247   : > { %2551 = vmatprep.subr.bf16.mxu1 %v4326_v0 }
 0x24a   : > { %2552 = vmatpush3.bf16.msra.mxu1 %v3770_v54 }
 0x24b   : > { %2553 = vmatprep.subr.bf16.mxu1 %v4326_v0 }
 0x24e   : > { %2554 = vmatpush3.bf16.msra.mxu1 %v3774_v55 }
 0x24f   : > { %2555 = vmatprep.subr.bf16.mxu1 %v4326_v0 }
 0x252   : > { %2556 = vmatpush3.bf16.msra.mxu1 %v3778_v42 }
 0x253   : > { %2557 = vmatprep.subr.bf16.mxu1 %v4326_v0 }
 0x256   : > { %2558 = vmatpush3.bf16.msra.mxu1 %v3782_v46  ;;  %v4384_v46 = vmov 0  }
 0x257   : > { %2559 = vmatprep.subr.bf16.mxu1 %v4326_v0  ;;  %v4383_v0 = vmov 1.0|1.0  }
 0x2fb   : > { %v918_v49 = vpop.f32.mrf.mxu1 }
 0x2fc   : > { %v919_v1 = vadd.f32 %v3790_v48, %v918_v49 }
 0x2fd   : > { %v2523_v28 = vpop.f32.mrf.mxu1 }
 0x2fe   : > { %v3794_v38 = vadd.f32 %v919_v1, %v3582_v19  ;;  %v4387_v19 = vmov 0.0   ;;  %v3829_v28 = vld [vmem:[#allocation11] sm:$0xff]  }
 0x2ff   : > { %v921_v45 = vpop.f32.mrf.mxu1  ;;  %4388 = vst [vmem:[#allocation32_spill] sm:$0xff] %v3829_v28  ;;  %2560 = vmatpush3.bf16.msra.mxu1 %v3829_v28 }
 0x300   : > { %vm925_vm12 = vcmp.gt.f32.partialorder %v3794_v38, 0.5  ;;  %2565 = vmatprep.subr.bf16.mxu1 %v4387_v19  ;;  %v3836_v45 = vld [vmem:[%s4307_s7] ss:$0 sm:$0xff] }
 0x301   : > { %v2524_v42 = vpop.f32.mrf.mxu1  ;;  %vm2249_vm13 = vmpackc.low %vm925_vm12, %vm925_vm12 }
 0x302   : > { %2542 = vmatmul.mubr.msk.bf16.vlgmr.msra.gmra.mxu0 %vm2249_vm13, %v4383_v0 }
 0x303   : > { %1134 = vmatpush1.bf16.msra.mxu0 %v3535_v4  ;;  %1165 = vmatprep.mubr.bf16.mxu0 %v4384_v46 }
 0x304   : > { %1135 = vmatprep.subr.bf16.mxu0 %v3538_v5 }
 0x307   : > { %1136 = vmatpush1.bf16.msra.mxu0 %v3544_v7 }
 0x308   : > { %1137 = vmatprep.subr.bf16.mxu0 %v3547_v8 }
 0x30b   : > { %1138 = vmatpush1.bf16.msra.mxu0 %v3554_v10 }
 0x30c   : > { %1139 = vmatprep.subr.bf16.mxu0 %v3557_v11 }
 0x30f   : > { %1140 = vmatpush1.bf16.msra.mxu0 %v3564_v13 }
 0x310   : > { %1141 = vmatprep.subr.bf16.mxu0 %v3567_v14 }
 0x313   : > { %1142 = vmatpush1.bf16.msra.mxu0 %v3574_v16 }
 0x314   : > { %1143 = vmatprep.subr.bf16.mxu0 %v3577_v17 }
 0x317   : > { %1144 = vmatpush1.bf16.msra.mxu0 %v3585_v20 }
 0x318   : > { %1145 = vmatprep.subr.bf16.mxu0 %v3587_v21 }
 0x31b   : > { %1146 = vmatpush1.bf16.msra.mxu0 %v3595_v23 }
 0x31c   : > { %1147 = vmatprep.subr.bf16.mxu0 %v3598_v24 }
 0x31f   : > { %1148 = vmatpush1.bf16.msra.mxu0 %v3612_v27 }
 0x320   : > { %2585 = vmatprep.subr.bf16.mxu0 %v4387_v19 }
 0x322   : > { %2266 = vmatmul.mubr.msk.bf16.vlgmr.msra.gmra.mxu0 %vm3819_vm14, %v4383_v0 }
 0x323   : > { %2587 = vmatprep.mubr.msk.bf16.mxu0 %vm3281_vm0, %v4387_v19 }
 0x3c2   : > { %v1017_v47 = vpop.f32.mrf.mxu0 }
 0x3c3   : > { %v1018_v42 = vadd.f32 %v3836_v45, %v1017_v47 }
 0x3c4   : > { %v2543_v49 = vpop.f32.mrf.mxu0 }
 0x3c5   : > { %vm1023_vm15 = vcmp.gt.f32.partialorder %v1018_v42, 0.5 }
 0x3c6   : > { %v2251_v27 = vsel %vm1023_vm15, 1.0, %v4387_v19  ;;  %vm2261_vm1 = vmpackc.low %vm1023_vm15, %vm1023_vm15  ;;  %v1020_v24 = vpop.f32.mrf.mxu0 }
 0x3c7   : > { %v1380_v23 = vsub.f32 1.0, %v2251_v27  ;;  %2562 = vmatmul.mubr.msk.bf16.vlgmr.msra.gmra.mxu1 %vm2261_vm1, %v4383_v0 }
 0x3c8   : > { %2566 = vmatpush3.bf16.msra.mxu1 %v3532_v3  ;;  %v2544_v21 = vpop.f32.mrf.mxu0  ;;  %2581 = vmatprep.mubr.msk.bf16.mxu1 %vm3281_vm0, %v4387_v19 }
 0x3c9   : > { %v1381_v20 = vmul.f32 0.25, %v1380_v23  ;;  %2567 = vmatprep.subr.bf16.mxu1 %v4387_v19  ;;  %v2222_v21 = vsel %vm764_vm8, 1.0, %v4387_v19 }
 0x3cb   : > { %v3845_v17 = vmul.f32 %v1381_v20, %v1018_v42  ;;  %v1214_v20 = vsub.f32 1.0, %v2222_v21 }
 0x3cc   : > { %2568 = vmatpush3.bf16.msra.mxu1 %v3542_v6 }
 0x3cd   : > { %2569 = vmatprep.subr.bf16.mxu1 %v4387_v19  ;;  %v1217_v23 = vmul.f32 0.25, %v1214_v20 }
 0x3cf   : > { %v1220_v47 = vmul.f32 %v1217_v23, %v3732_v44 }
 0x3d0   : > { %2570 = vmatpush3.bf16.msra.mxu1 %v3550_v9 }
 0x3d1   : > { %2571 = vmatprep.subr.bf16.mxu1 %v4387_v19 }
 0x3d4   : > { %2572 = vmatpush3.bf16.msra.mxu1 %v3560_v12 }
 0x3d5   : > { %2573 = vmatprep.subr.bf16.mxu1 %v4387_v19 }
 0x3d8   : > { %2574 = vmatpush3.bf16.msra.mxu1 %v3570_v15 }
 0x3d9   : > { %2575 = vmatprep.subr.bf16.mxu1 %v4387_v19 }
 0x3dc   : > { %2576 = vmatpush3.bf16.msra.mxu1 %v3579_v18 }
 0x3dd   : > { %2577 = vmatprep.subr.bf16.mxu1 %v4387_v19 }
 0x3e0   : > { %2578 = vmatpush3.bf16.msra.mxu1 %v3593_v22 }
 0x3e1   : > { %2579 = vmatprep.subr.bf16.mxu1 %v4387_v19 }
 0x3e2   : > { %v1167_v24 = vpop.f32.mrf.mxu0 }
 0x3e3   : > { %v1168_v27 = vadd.f32 %v1167_v24, %v3728_v43 }
 0x3e4   : > { %v1169_v42 = vpop.f32.mrf.mxu0  ;;  %2580 = vmatpush3.bf16.msra.mxu1 %v3610_v26 }
 0x3e5   : > { %v3865_v49 = vadd.f32 %v1220_v47, %v1168_v27  ;;  %v1170_v21 = vadd.f32 %v1169_v42, %v3645_v36  ;;  %2611 = vmatprep.subr.bf16.mxu1 %v4387_v19 }
 0x3e6   : > { %v1171_v18 = vpop.f32.mrf.mxu0 }
 0x3e7   : > { %v3870_v20 = vadd.f32 %v3657_v56, %v1170_v21  ;;  %2582 = vmatmul.mubr.msk.bf16.vlgmr.msra.gmra.mxu1 %vm3819_vm14, %v4383_v0  ;;  %v3896_v18 = vld [vmem:[%s4309_s9] ss:$0 sm:$0xff]  ;;  %vm1226_vm5 = vcmp.gt.f32.partialorder %v3865_v49, 0.5 }
 0x3e8   : > { %v1172_v24 = vpop.f32.mrf.mxu0  ;;  %2612 = vmatpush3.bf16.msra.mxu1 %v3698_v31  ;;  %2627 = vmatprep.mubr.msk.bf16.mxu1 %vm3281_vm0, %v4387_v19 }
 0x3e9   : > { %2613 = vmatprep.subr.bf16.mxu1 %v4387_v19  ;;  %vm1227_vm2 = vcmp.gt.f32.partialorder %v3870_v20, 0.5 }
 0x3ec   : > { %2614 = vmatpush3.bf16.msra.mxu1 %v3701_v33 }
 0x3ed   : > { %2615 = vmatprep.subr.bf16.mxu1 %v4387_v19 }
 0x3f0   : > { %2616 = vmatpush3.bf16.msra.mxu1 %v3705_v35 }
 0x3f1   : > { %2617 = vmatprep.subr.bf16.mxu1 %v4387_v19 }
 0x3f4   : > { %2618 = vmatpush3.bf16.msra.mxu1 %v3709_v37 }
 0x3f5   : > { %2619 = vmatprep.subr.bf16.mxu1 %v4387_v19 }
 0x3f8   : > { %2620 = vmatpush3.bf16.msra.mxu1 %v3713_v39 }
 0x3f9   : > { %2621 = vmatprep.subr.bf16.mxu1 %v4387_v19 }
 0x3fc   : > { %2622 = vmatpush3.bf16.msra.mxu1 %v3717_v40 }
 0x3fd   : > { %2623 = vmatprep.subr.bf16.mxu1 %v4387_v19 }
 0x400   : > { %2624 = vmatpush3.bf16.msra.mxu1 %v3721_v41 }
 0x401   : > { %2625 = vmatprep.subr.bf16.mxu1 %v4387_v19 }
 0x404   : > { %2626 = vmatpush3.bf16.msra.mxu1 %v3743_v51 }
 0x405   : > { %1441 = vmatprep.subr.bf16.mxu1 %v3530_v2 }
 0x487   : > { %v1115_v56 = vpop.f32.mrf.mxu1 }
 0x488   : > { %v1116_v44 = vadd.f32 %v3896_v18, %v1115_v56 }
 0x489   : > { %v2563_v1 = vpop.f32.mrf.mxu1 }
 0x48a   : > { %v1121_v23 = vadd.f32 %v1116_v44, %v3794_v38 }
 0x48b   : > { %v1118_v27 = vpop.f32.mrf.mxu1 }
 0x48c   : > { %1122 = vst [vmem:[%s3902_s2] sm:$0xff] %v1121_v23 }
 0x48d   : > { %v2564_v47 = vpop.f32.mrf.mxu1 }
 0x4a7   : > { %v1208_v42 = vpop.f32.mrf.mxu1 }
 0x4a8   : > { %v1209_v2 = vadd.f32 %v1208_v42, %v3642_v34 }
 0x4a9   : > { %v2583_v21 = vpop.f32.mrf.mxu1 }
 0x4aa   : > { %v1225_v24 = vadd.f32 %v3654_v52, %v1209_v2 }
 0x4ab   : > { %v1211_v51 = vpop.f32.mrf.mxu1 }
 0x4ac   : > { %vm1228_vm3 = vcmp.gt.f32.partialorder %v1225_v24, 0.5 }
 0x4ad   : > { %v2271_v56 = vsel %vm1228_vm3, 1.0, %v4387_v19  ;;  %vm1235_vm4 = vmand %vm1227_vm2, %vm1228_vm3  ;;  %v2584_v44 = vpop.f32.mrf.mxu1 }
 0x4ae   : > { %v1524_v1 = vsub.f32 1.0, %v2271_v56  ;;  %v2272_v23 = vsel %vm1235_vm4, 1.0, %v4387_v19 }
 0x4af   : > { %v1238_v27 = vpack.c.bf16 %v2272_v23, %v2272_v23 }
 0x4b0   : > { %v1527_v47 = vmul.f32 0.25, %v1524_v1 }
 0x4b1   : > { %v1240_v42 = vsel %vm781_vm6, %v1238_v27, 0 }
 0x4b2   : > { %2586 = vmatpush3.bf16.msra.mxu0 %v1240_v42  ;;  %v3913_v21 = vmul.f32 %v1527_v47, %v1225_v24  ;;  %v4390_v42 = vld [vmem:[#allocation31_spill] sm:$0xff] }
 0x4b3   : > { %2591 = vmatprep.subr.bf16.mxu0 %v4387_v19 }
 0x4b5   : > { %2588 = vmatmul.mubr.msk.bf16.vlgmr.msra.gmra.mxu0 %vm777_vm7, %v3659_v57 }
 0x4b6   : > { %2592 = vmatpush3.bf16.msra.mxu0 %v3661_v58  ;;  %2607 = vmatprep.mubr.msk.bf16.mxu0 %vm3281_vm0, %v4387_v19 }
 0x4b7   : > { %2593 = vmatprep.subr.bf16.mxu0 %v4387_v19 }
 0x4ba   : > { %2594 = vmatpush3.bf16.msra.mxu0 %v3667_v59 }
 0x4bb   : > { %2595 = vmatprep.subr.bf16.mxu0 %v4387_v19 }
 0x4be   : > { %2596 = vmatpush3.bf16.msra.mxu0 %v3673_v60 }
 0x4bf   : > { %2597 = vmatprep.subr.bf16.mxu0 %v4387_v19 }
 0x4c2   : > { %2598 = vmatpush3.bf16.msra.mxu0 %v3677_v61 }
 0x4c3   : > { %2599 = vmatprep.subr.bf16.mxu0 %v4387_v19 }
 0x4c6   : > { %2600 = vmatpush3.bf16.msra.mxu0 %v3681_v62 }
 0x4c7   : > { %2601 = vmatprep.subr.bf16.mxu0 %v4387_v19 }
 0x4ca   : > { %2602 = vmatpush3.bf16.msra.mxu0 %v3685_v63 }
 0x4cb   : > { %2603 = vmatprep.subr.bf16.mxu0 %v4387_v19 }
 0x4ce   : > { %2604 = vmatpush3.bf16.msra.mxu0 %v3689_v25 }
 0x4cf   : > { %2605 = vmatprep.subr.bf16.mxu0 %v4387_v19 }
 0x4d2   : > { %2606 = vmatpush3.bf16.msra.mxu0 %v3694_v29 }
 0x4d3   : > { %2631 = vmatprep.subr.bf16.mxu0 %v4387_v19 }
 0x575   : > { %v1276_v52 = vpop.f32.mrf.mxu0 }
 0x576   : > { %v1282_v51 = vsel %vm1226_vm5, %v1276_v52, 0.0  ;;  %v2239_v52 = vsel %vm925_vm12, 1.0, %v4387_v19 }
 0x577   : > { %v1286_v2 = vadd.f32 %v3741_v50, %v1282_v51  ;;  %v2589_v24 = vpop.f32.mrf.mxu0  ;;  %v4389_v50 = vld [vmem:[#allocation30_spill] sm:$0xff]  ;;  %v1332_v51 = vsub.f32 1.0, %v2239_v52 }
 0x579   : > { %vm1287_vm8 = vcmp.gt.f32.partialorder %v1286_v2, 0.5  ;;  %v1279_v56 = vpop.f32.mrf.mxu0 }
 0x57a   : > { %v2274_v44 = vsel %vm1287_vm8, 1.0, %v4387_v19  ;;  %vm2275_vm9 = vmpackc.low %vm1287_vm8, %vm1287_vm8 }
 0x57b   : > { %v1591_v1 = vsub.f32 1.0, %v2274_v44  ;;  %v2590_v23 = vpop.f32.mrf.mxu0  ;;  %2608 = vmatmul.mubr.msk.bf16.vlgmr.msra.gmra.mxu0 %vm2275_vm9, %v4383_v0 }
 0x57c   : > { %2632 = vmatpush3.bf16.msra.mxu0 %v3757_v30  ;;  %2647 = vmatprep.mubr.msk.bf16.mxu0 %vm3281_vm0, %v4387_v19 }
 0x57d   : > { %v1592_v27 = vmul.f32 0.25, %v1591_v1  ;;  %2633 = vmatprep.subr.bf16.mxu0 %v4387_v19  ;;  %v4391_v1 = vld [vmem:[#allocation27_spill] sm:$0xff] }
 0x57f   : > { %v3946_v47 = vmul.f32 %v1592_v27, %v1286_v2  ;;  %v1333_v2 = vmul.f32 0.25, %v1332_v51 }
 0x580   : > { %2634 = vmatpush3.bf16.msra.mxu0 %v3760_v32 }
 0x581   : > { %2635 = vmatprep.subr.bf16.mxu0 %v4387_v19  ;;  %v1334_v27 = vmul.f32 %v1333_v2, %v3794_v38 }
 0x584   : > { %2636 = vmatpush3.bf16.msra.mxu0 %v3766_v53 }
 0x585   : > { %2637 = vmatprep.subr.bf16.mxu0 %v4387_v19 }
 0x588   : > { %2638 = vmatpush3.bf16.msra.mxu0 %v3770_v54 }
 0x589   : > { %2639 = vmatprep.subr.bf16.mxu0 %v4387_v19 }
 0x58c   : > { %2640 = vmatpush3.bf16.msra.mxu0 %v3774_v55 }
 0x58d   : > { %2641 = vmatprep.subr.bf16.mxu0 %v4387_v19 }
 0x590   : > { %2642 = vmatpush3.bf16.msra.mxu0 %v4389_v50 }
 0x591   : > { %2643 = vmatprep.subr.bf16.mxu0 %v4387_v19 }
 0x594   : > { %2644 = vmatpush3.bf16.msra.mxu0 %v4390_v42 }
 0x595   : > { %2645 = vmatprep.subr.bf16.mxu0 %v4387_v19 }
 0x598   : > { %2646 = vmatpush3.bf16.msra.mxu0 %v3829_v28 }
 0x599   : > { %2651 = vmatprep.subr.bf16.mxu0 %v4387_v19 }
 0x63b   : > { %v1325_v24 = vpop.f32.mrf.mxu0 }
 0x63c   : > { %v1326_v56 = vadd.f32 %v3790_v48, %v1325_v24 }
 0x63d   : > { %v2609_v44 = vpop.f32.mrf.mxu0 }
 0x63e   : > { %v3967_v23 = vadd.f32 %v4391_v1, %v1326_v56 }
 0x63f   : > { %v1328_v42 = vpop.f32.mrf.mxu0 }
 0x640   : > { %v1335_v28 = vadd.f32 %v1334_v27, %v3967_v23 }
 0x641   : > { %v2610_v50 = vpop.f32.mrf.mxu0 }
 0x642   : > { %vm1336_vm10 = vcmp.gt.f32.partialorder %v1335_v28, 0.5 }
 0x643   : > { %v2277_v55 = vsel %vm1336_vm10, 1.0, %v4387_v19  ;;  %vm2278_vm11 = vmpackc.low %vm1336_vm10, %vm1336_vm10 }
 0x644   : > { %v1640_v52 = vsub.f32 1.0, %v2277_v55  ;;  %2628 = vmatmul.mubr.msk.bf16.vlgmr.msra.gmra.mxu1 %vm2278_vm11, %v4383_v0  ;;  %v3987_v55 = vld [vmem:[%s3508_s24 + $0x10] sm:$0xff] }
 0x645   : > { %1442 = vmatpush1.bf16.msra.mxu1 %v3535_v4  ;;  %1473 = vmatprep.mubr.bf16.mxu1 %v4384_v46  ;;  %v4392_v4 = vld [vmem:[#allocation19_spill] sm:$0xff] }
 0x646   : > { %v1641_v51 = vmul.f32 0.25, %v1640_v52  ;;  %1443 = vmatprep.subr.bf16.mxu1 %v3538_v5  ;;  %v4393_v5 = vld [vmem:[#allocation21_spill] sm:$0xff] }
 0x648   : > { %v3976_v38 = vmul.f32 %v1641_v51, %v1335_v28  ;;  %v4394_v28 = vld [vmem:[#allocation22_spill] sm:$0xff]  ;;  %v4401_v51 = vld [vmem:[#allocation20_spill] sm:$0xff] }
 0x649   : > { %1444 = vmatpush1.bf16.msra.mxu1 %v3544_v7  ;;  %v4395_v7 = vld [vmem:[#allocation28_spill] sm:$0xff] }
 0x64a   : > { %1445 = vmatprep.subr.bf16.mxu1 %v3547_v8  ;;  %v3993_v8 = vadd.f32 %v3987_v55, %v4395_v7 }
 0x64c   : > { %vm1437_vm12 = vcmp.gt.f32.partialorder %v3993_v8, 0.5 }
 0x64d   : > { %1446 = vmatpush1.bf16.msra.mxu1 %v3554_v10  ;;  %v4396_v10 = vld [vmem:[#allocation23_spill] sm:$0xff]  ;;  %vm4002_vm13 = vmpackc.low %vm1437_vm12, %vm1437_vm12 }
 0x64e   : > { %1447 = vmatprep.subr.bf16.mxu1 %v3557_v11  ;;  %v4397_v11 = vld [vmem:[#allocation24_spill] sm:$0xff] }
 0x651   : > { %1448 = vmatpush1.bf16.msra.mxu1 %v3564_v13  ;;  %v4398_v13 = vld [vmem:[#allocation25_spill] sm:$0xff] }
 0x652   : > { %1449 = vmatprep.subr.bf16.mxu1 %v3567_v14 }
 0x655   : > { %1450 = vmatpush1.bf16.msra.mxu1 %v3574_v16 }
 0x656   : > { %1451 = vmatprep.subr.bf16.mxu1 %v4392_v4 }
 0x659   : > { %1452 = vmatpush1.bf16.msra.mxu1 %v4393_v5 }
 0x65a   : > { %1453 = vmatprep.subr.bf16.mxu1 %v4394_v28 }
 0x65d   : > { %1454 = vmatpush1.bf16.msra.mxu1 %v4396_v10 }
 0x65e   : > { %1455 = vmatprep.subr.bf16.mxu1 %v4397_v11 }
 0x661   : > { %1456 = vmatpush1.bf16.msra.mxu1 %v4398_v13 }
 0x662   : > { %2671 = vmatprep.subr.bf16.mxu1 %v4387_v19 }
 0x664   : > { %2287 = vmatmul.mubr.msk.bf16.vlgmr.msra.gmra.mxu1 %vm4002_vm13, %v4383_v0 }
 0x665   : > { %2673 = vmatprep.mubr.msk.bf16.mxu1 %vm3281_vm0, %v4387_v19 }
 0x704   : > { %v1374_v16 = vpop.f32.mrf.mxu1 }
 0x705   : > { %v1375_v50 = vadd.f32 %v3836_v45, %v1374_v16 }
 0x706   : > { %v2629_v42 = vpop.f32.mrf.mxu1 }
 0x707   : > { %v1383_v2 = vadd.f32 %v3845_v17, %v1375_v50  ;;  %v2270_v17 = vsel %vm1227_vm2, 1.0, %v4387_v19 }
 0x708   : > { %v1377_v24 = vpop.f32.mrf.mxu1 }
 0x709   : > { %vm1384_vm14 = vcmp.gt.f32.partialorder %v1383_v2, 0.5 }
 0x70a   : > { %v2280_v56 = vsel %vm1384_vm14, 1.0, %v4387_v19  ;;  %vm2281_vm15 = vmpackc.low %vm1384_vm14, %vm1384_vm14  ;;  %v2630_v44 = vpop.f32.mrf.mxu1 }
 0x70b   : > { %v1688_v1 = vsub.f32 1.0, %v2280_v56  ;;  %2648 = vmatmul.mubr.msk.bf16.vlgmr.msra.gmra.mxu0 %vm2281_vm15, %v4383_v0 }
 0x70c   : > { %2652 = vmatpush3.bf16.msra.mxu0 %v3532_v3  ;;  %2667 = vmatprep.mubr.msk.bf16.mxu0 %vm3281_vm0, %v4387_v19  ;;  %v2269_v3 = vsel %vm1226_vm5, 1.0, %v4387_v19 }
 0x70d   : > { %v1689_v27 = vmul.f32 0.25, %v1688_v1  ;;  %2653 = vmatprep.subr.bf16.mxu0 %v4387_v19 }
 0x70f   : > { %v4020_v52 = vmul.f32 %v1689_v27, %v1383_v2 }
 0x710   : > { %2654 = vmatpush3.bf16.msra.mxu0 %v3542_v6  ;;  %v1522_v6 = vsub.f32 1.0, %v2269_v3 }
 0x711   : > { %2655 = vmatprep.subr.bf16.mxu0 %v4387_v19 }
 0x712   : > { %v1525_v4 = vmul.f32 0.25, %v1522_v6 }
 0x714   : > { %2656 = vmatpush3.bf16.msra.mxu0 %v3550_v9  ;;  %v1523_v9 = vsub.f32 1.0, %v2270_v17  ;;  %v1528_v7 = vmul.f32 %v1525_v4, %v3865_v49  ;;  %v2990_v49 = vld [vmem:[#allocation7 + $0xac] ss:$12 sps:$4 sm:$0xff]  }
 0x715   : > { %2657 = vmatprep.subr.bf16.mxu0 %v4387_v19 }
 0x718   : > { %2658 = vmatpush3.bf16.msra.mxu0 %v3560_v12  ;;  %v1526_v12 = vmul.f32 0.25, %v1523_v9 }
 0x719   : > { %2659 = vmatprep.subr.bf16.mxu0 %v4387_v19 }
 0x71a   : > { %v1529_v13 = vmul.f32 %v1526_v12, %v3870_v20 }
 0x71c   : > { %2660 = vmatpush3.bf16.msra.mxu0 %v3570_v15 }
 0x71d   : > { %2661 = vmatprep.subr.bf16.mxu0 %v4387_v19 }
 0x720   : > { %2662 = vmatpush3.bf16.msra.mxu0 %v4401_v51 }
 0x721   : > { %2663 = vmatprep.subr.bf16.mxu0 %v4387_v19 }
 0x724   : > { %v1475_v5 = vpop.f32.mrf.mxu1  ;;  %2664 = vmatpush3.bf16.msra.mxu0 %v3593_v22 }
 0x725   : > { %v1476_v28 = vadd.f32 %v1475_v5, %v3728_v43  ;;  %2665 = vmatprep.subr.bf16.mxu0 %v4387_v19 }
 0x726   : > { %v1477_v15 = vpop.f32.mrf.mxu1 }
 0x727   : > { %v4042_v10 = vadd.f32 %v1528_v7, %v1476_v28  ;;  %v1478_v11 = vadd.f32 %v1477_v15, %v3645_v36  ;;  %v4405_v7 = vld [vmem:[#allocation31_spill] sm:$0xff] }
 0x728   : > { %2666 = vmatpush3.bf16.msra.mxu0 %v3610_v26  ;;  %v1479_v16 = vpop.f32.mrf.mxu1  ;;  %v4402_v26 = vld [vmem:[#allocation26_spill] sm:$0xff] }
 0x729   : > { %v4047_v50 = vadd.f32 %v1529_v13, %v1478_v11  ;;  %2697 = vmatprep.subr.bf16.mxu0 %v4387_v19  ;;  %vm1534_vm4 = vcmp.gt.f32.partialorder %v4042_v10, 0.5 }
 0x72a   : > { %v1480_v22 = vpop.f32.mrf.mxu1 }
 0x72b   : > { %2668 = vmatmul.mubr.msk.bf16.vlgmr.msra.gmra.mxu0 %vm4002_vm13, %v4383_v0  ;;  %vm1535_vm1 = vcmp.gt.f32.partialorder %v4047_v50, 0.5 }
 0x72c   : > { %2698 = vmatpush3.bf16.msra.mxu0 %v3698_v31  ;;  %2713 = vmatprep.mubr.msk.bf16.mxu0 %vm3281_vm0, %v4387_v19 }
 0x72d   : > { %2699 = vmatprep.subr.bf16.mxu0 %v4387_v19 }
 0x730   : > { %2700 = vmatpush3.bf16.msra.mxu0 %v3701_v33 }
 0x731   : > { %2701 = vmatprep.subr.bf16.mxu0 %v4387_v19 }
 0x734   : > { %2702 = vmatpush3.bf16.msra.mxu0 %v3705_v35 }
 0x735   : > { %2703 = vmatprep.subr.bf16.mxu0 %v4387_v19 }
 0x738   : > { %2704 = vmatpush3.bf16.msra.mxu0 %v3709_v37 }
 0x739   : > { %2705 = vmatprep.subr.bf16.mxu0 %v4387_v19 }
 0x73c   : > { %2706 = vmatpush3.bf16.msra.mxu0 %v3713_v39 }
 0x73d   : > { %2707 = vmatprep.subr.bf16.mxu0 %v4387_v19 }
 0x740   : > { %2708 = vmatpush3.bf16.msra.mxu0 %v3717_v40 }
 0x741   : > { %2709 = vmatprep.subr.bf16.mxu0 %v4387_v19 }
 0x744   : > { %2710 = vmatpush3.bf16.msra.mxu0 %v3721_v41 }
 0x745   : > { %2711 = vmatprep.subr.bf16.mxu0 %v4387_v19 }
 0x748   : > { %2712 = vmatpush3.bf16.msra.mxu0 %v4402_v26 }
 0x749   : > { %1749 = vmatprep.subr.bf16.mxu0 %v2990_v49 }
 0x7cb   : > { %v1422_v20 = vpop.f32.mrf.mxu0 }
 0x7cc   : > { %v1423_v14 = vadd.f32 %v3896_v18, %v1422_v20 }
 0x7cd   : > { %v2649_v42 = vpop.f32.mrf.mxu0 }
 0x7ce   : > { %v1428_v2 = vadd.f32 %v1423_v14, %v3967_v23  ;;  %v2991_v14 = vld [vmem:[#allocation7 + $0xa8] ss:$12 sps:$4 sm:$0xff]  }
 0x7cf   : > { %v1425_v24 = vpop.f32.mrf.mxu0  ;;  %v2992_v42 = vld [vmem:[#allocation7 + $0x94] ss:$12 sps:$4 sm:$0xff]  }
 0x7d0   : > { %2283 = vst [vmem:[%s3902_s2 + $0x8] sm:$0xff] %v1428_v2  ;;  %v2993_v2 = vld [vmem:[#allocation7 + $0x90] ss:$12 sps:$4 sm:$0xff]   ;;  %v2285_v24 = vsel %vm1437_vm12, 1.0, %v4387_v19 }
 0x7d1   : > { %v2650_v56 = vpop.f32.mrf.mxu0 }
 0x7d2   : > { %v2995_v56 = vld [vmem:[#allocation7 + $0x78] ss:$12 sps:$4 sm:$0xff]  }
 0x7eb   : > { %v1516_v44 = vpop.f32.mrf.mxu0 }
 0x7ec   : > { %v1517_v1 = vadd.f32 %v1516_v44, %v3642_v34  ;;  %v1741_v44 = vsub.f32 1.0, %v2285_v24 }
 0x7ed   : > { %v2669_v27 = vpop.f32.mrf.mxu0 }
 0x7ee   : > { %v1533_v3 = vadd.f32 %v3913_v21, %v1517_v1  ;;  %v2996_v1 = vld [vmem:[#allocation7 + $0x64] ss:$12 sps:$4 sm:$0xff]   ;;  %v1742_v27 = vmul.f32 0.25, %v1741_v44 }
 0x7ef   : > { %v1519_v17 = vpop.f32.mrf.mxu0 }
 0x7f0   : > { %vm1536_vm2 = vcmp.gt.f32.partialorder %v1533_v3, 0.5  ;;  %v2999_v17 = vld [vmem:[#allocation7 + $0x48] ss:$12 sps:$4 sm:$0xff]  }
 0x7f1   : > { %v2292_v6 = vsel %vm1536_vm2, 1.0, %v4387_v19  ;;  %vm1543_vm3 = vmand %vm1535_vm1, %vm1536_vm2  ;;  %v2670_v9 = vpop.f32.mrf.mxu0 }
 0x7f2   : > { %v1832_v23 = vsub.f32 1.0, %v2292_v6  ;;  %v2293_v51 = vsel %vm1543_vm3, 1.0, %v4387_v19  ;;  %v3000_v6 = vld [vmem:[#allocation7 + $0x34] ss:$12 sps:$4 sm:$0xff]   ;;  %v1743_v9 = vmul.f32 %v1742_v27, %v3993_v8 }
 0x7f3   : > { %v1546_v4 = vpack.c.bf16 %v2293_v51, %v2293_v51  ;;  %v3001_v51 = vld [vmem:[#allocation7 + $0x30] ss:$12 sps:$4 sm:$0xff]  }
 0x7f4   : > { %v1835_v12 = vmul.f32 0.25, %v1832_v23  ;;  %v4146_v23 = vld [vmem:[%s3508_s24 + $0x18] sm:$0xff] }
 0x7f5   : > { %v1548_v5 = vsel %vm781_vm6, %v1546_v4, 0  ;;  %v3002_v4 = vld [vmem:[#allocation7 + $0x1c] ss:$12 sps:$4 sm:$0xff]  }
 0x7f6   : > { %2672 = vmatpush3.bf16.msra.mxu1 %v1548_v5  ;;  %v4081_v28 = vmul.f32 %v1835_v12, %v1533_v3  ;;  %v2998_v3 = vld [vmem:[#allocation7 + $0x4c] ss:$12 sps:$4 sm:$0xff]   ;;  %v1744_v12 = vadd.f32 %v4146_v23, %v1743_v9 }
 0x7f7   : > { %2677 = vmatprep.subr.bf16.mxu1 %v4387_v19  ;;  %v3003_v5 = vld [vmem:[#allocation7 + $0x18] ss:$12 sps:$4 sm:$0xff]  }
 0x7f8   : > { %vm1745_vm11 = vcmp.gt.f32.partialorder %v1744_v12, 0.5 }
 0x7f9   : > { %2674 = vmatmul.mubr.msk.bf16.vlgmr.msra.gmra.mxu1 %vm777_vm7, %v3659_v57  ;;  %vm4149_vm12 = vmpackc.low %vm1745_vm11, %vm1745_vm11 }
 0x7fa   : > { %2678 = vmatpush3.bf16.msra.mxu1 %v3661_v58  ;;  %2693 = vmatprep.mubr.msk.bf16.mxu1 %vm3281_vm0, %v4387_v19 }
 0x7fb   : > { %2679 = vmatprep.subr.bf16.mxu1 %v4387_v19 }
 0x7fe   : > { %2680 = vmatpush3.bf16.msra.mxu1 %v3667_v59 }
 0x7ff   : > { %2681 = vmatprep.subr.bf16.mxu1 %v4387_v19 }
 0x802   : > { %2682 = vmatpush3.bf16.msra.mxu1 %v3673_v60 }
 0x803   : > { %2683 = vmatprep.subr.bf16.mxu1 %v4387_v19 }
 0x806   : > { %2684 = vmatpush3.bf16.msra.mxu1 %v3677_v61 }
 0x807   : > { %2685 = vmatprep.subr.bf16.mxu1 %v4387_v19 }
 0x80a   : > { %2686 = vmatpush3.bf16.msra.mxu1 %v3681_v62 }
 0x80b   : > { %2687 = vmatprep.subr.bf16.mxu1 %v4387_v19 }
 0x80e   : > { %2688 = vmatpush3.bf16.msra.mxu1 %v3685_v63 }
 0x80f   : > { %2689 = vmatprep.subr.bf16.mxu1 %v4387_v19 }
 0x812   : > { %2690 = vmatpush3.bf16.msra.mxu1 %v3689_v25 }
 0x813   : > { %2691 = vmatprep.subr.bf16.mxu1 %v4387_v19 }
 0x816   : > { %2692 = vmatpush3.bf16.msra.mxu1 %v3694_v29 }
 0x817   : > { %2717 = vmatprep.subr.bf16.mxu1 %v4387_v19 }
 0x8b9   : > { %v1584_v57 = vpop.f32.mrf.mxu1 }
 0x8ba   : > { %v1590_v58 = vsel %vm1534_vm4, %v1584_v57, 0.0  ;;  %v3004_v57 = vld [vmem:[#allocation7 + $0x4] ss:$12 sps:$4 sm:$0xff]  }
 0x8bb   : > { %v1594_v59 = vadd.f32 %v3946_v47, %v1590_v58  ;;  %v2675_v60 = vpop.f32.mrf.mxu1  ;;  %v4404_v47 = vld [vmem:[#allocation30_spill] sm:$0xff]  ;;  %v3005_v58 = vld [vmem:[#allocation7] ss:$12 sps:$4 sm:$0xff]  }
 0x8bd   : > { %vm1595_vm5 = vcmp.gt.f32.partialorder %v1594_v59, 0.5  ;;  %v1587_v61 = vpop.f32.mrf.mxu1 }
 0x8be   : > { %v2295_v62 = vsel %vm1595_vm5, 1.0, %v4387_v19  ;;  %vm2296_vm8 = vmpackc.low %vm1595_vm5, %vm1595_vm5 }
 0x8bf   : > { %v1893_v63 = vsub.f32 1.0, %v2295_v62  ;;  %v2676_v25 = vpop.f32.mrf.mxu1  ;;  %2694 = vmatmul.mubr.msk.bf16.vlgmr.msra.gmra.mxu1 %vm2296_vm8, %v4383_v0 }
 0x8c0   : > { %2718 = vmatpush3.bf16.msra.mxu1 %v3757_v30  ;;  %2733 = vmatprep.mubr.msk.bf16.mxu1 %vm3281_vm0, %v4387_v19  ;;  %v4403_v30 = vld [vmem:[#allocation29_spill] sm:$0xff] }
 0x8c1   : > { %v1894_v29 = vmul.f32 0.25, %v1893_v63  ;;  %2719 = vmatprep.subr.bf16.mxu1 %v4387_v19 }
 0x8c3   : > { %v4114_v21 = vmul.f32 %v1894_v29, %v1594_v59  ;;  %v3020_v59 = vld [vmem:[#allocation8 + $0x10] sm:$0xff]  }
 0x8c4   : > { %2720 = vmatpush3.bf16.msra.mxu1 %v3760_v32  ;;  %v4406_v32 = vld [vmem:[#allocation32_spill] sm:$0xff] }
 0x8c5   : > { %2721 = vmatprep.subr.bf16.mxu1 %v4387_v19 }
 0x8c8   : > { %2722 = vmatpush3.bf16.msra.mxu1 %v3766_v53 }
 0x8c9   : > { %2723 = vmatprep.subr.bf16.mxu1 %v4387_v19 }
 0x8cc   : > { %2724 = vmatpush3.bf16.msra.mxu1 %v3770_v54 }
 0x8cd   : > { %2725 = vmatprep.subr.bf16.mxu1 %v4387_v19 }
 0x8d0   : > { %2726 = vmatpush3.bf16.msra.mxu1 %v4403_v30 }
 0x8d1   : > { %2727 = vmatprep.subr.bf16.mxu1 %v4387_v19 }
 0x8d4   : > { %2728 = vmatpush3.bf16.msra.mxu1 %v4404_v47  ;;  %v3006_v47 = vld [vmem:[#allocation7 + $0xb0] ss:$12 sps:$4 sm:$0xff]  }
 0x8d5   : > { %2729 = vmatprep.subr.bf16.mxu1 %v4387_v19 }
 0x8d8   : > { %2730 = vmatpush3.bf16.msra.mxu1 %v4405_v7 }
 0x8d9   : > { %2731 = vmatprep.subr.bf16.mxu1 %v4387_v19 }
 0x8dc   : > { %2732 = vmatpush3.bf16.msra.mxu1 %v4406_v32 }
 0x8dd   : > { %2737 = vmatprep.subr.bf16.mxu1 %v4387_v19 }
 0x97f   : > { %v1633_v53 = vpop.f32.mrf.mxu1 }
 0x980   : > { %v1634_v54 = vadd.f32 %v3790_v48, %v1633_v53 }
 0x981   : > { %v2695_v15 = vpop.f32.mrf.mxu1 }
 0x982   : > { %v4132_v11 = vadd.f32 %v3987_v55, %v1634_v54  ;;  %v3008_v54 = vld [vmem:[#allocation7 + $0x80] ss:$12 sps:$4 sm:$0xff]   ;;  %v3009_v15 = vld [vmem:[#allocation7 + $0x68] ss:$12 sps:$4 sm:$0xff]  }
 0x983   : > { %v1636_v13 = vpop.f32.mrf.mxu1 }
 0x984   : > { %v1643_v16 = vadd.f32 %v3976_v38, %v4132_v11  ;;  %v2994_v38 = vld [vmem:[#allocation7 + $0x7c] ss:$12 sps:$4 sm:$0xff]   ;;  %v2290_v13 = vsel %vm1534_vm4, 1.0, %v4387_v19 }
 0x985   : > { %v2696_v22 = vpop.f32.mrf.mxu1 }
 0x986   : > { %vm1644_vm9 = vcmp.gt.f32.partialorder %v1643_v16, 0.5  ;;  %v3010_v22 = vld [vmem:[#allocation7 + $0x50] ss:$12 sps:$4 sm:$0xff]  }
 0x987   : > { %v2298_v49 = vsel %vm1644_vm9, 1.0, %v4387_v19  ;;  %vm2299_vm10 = vmpackc.low %vm1644_vm9, %vm1644_vm9 }
 0x988   : > { %v1942_v20 = vsub.f32 1.0, %v2298_v49  ;;  %2714 = vmatmul.mubr.msk.bf16.vlgmr.msra.gmra.mxu0 %vm2299_vm10, %v4383_v0  ;;  %v1830_v49 = vsub.f32 1.0, %v2290_v13  ;;  %v3029_v13 = vld [vmem:[#allocation11 + $0x8] sm:$0xff]  }
 0x989   : > { %1750 = vmatpush1.bf16.msra.mxu0 %v2991_v14  ;;  %1781 = vmatprep.mubr.bf16.mxu0 %v4384_v46  ;;  %v2997_v46 = vld [vmem:[#allocation7 + $0x60] ss:$12 sps:$4 sm:$0xff]   ;;  %v3011_v14 = vld [vmem:[#allocation7 + $0x38] ss:$12 sps:$4 sm:$0xff]  }
 0x98a   : > { %v1943_v48 = vmul.f32 0.25, %v1942_v20  ;;  %1751 = vmatprep.subr.bf16.mxu0 %v2992_v42 }
 0x98c   : > { %v4139_v55 = vmul.f32 %v1943_v48, %v1643_v16  ;;  %v2291_v16 = vsel %vm1535_vm1, 1.0, %v4387_v19  ;;  %v1833_v48 = vmul.f32 0.25, %v1830_v49 }
 0x98d   : > { %1752 = vmatpush1.bf16.msra.mxu0 %v2993_v2  ;;  %v1831_v20 = vsub.f32 1.0, %v2291_v16 }
 0x98e   : > { %1753 = vmatprep.subr.bf16.mxu0 %v2994_v38  ;;  %v3012_v38 = vld [vmem:[#allocation7 + $0x20] ss:$12 sps:$4 sm:$0xff]  }
 0x98f   : > { %v1834_v42 = vmul.f32 0.25, %v1831_v20 }
 0x991   : > { %1754 = vmatpush1.bf16.msra.mxu0 %v2995_v56  ;;  %v1836_v56 = vmul.f32 %v1833_v48, %v4042_v10 }
 0x992   : > { %1755 = vmatprep.subr.bf16.mxu0 %v2996_v1 }
 0x995   : > { %1756 = vmatpush1.bf16.msra.mxu0 %v2997_v46  ;;  %v1837_v46 = vmul.f32 %v1834_v42, %v4047_v50 }
 0x996   : > { %1757 = vmatprep.subr.bf16.mxu0 %v2998_v3  ;;  %v3013_v3 = vld [vmem:[#allocation7 + $0x8] ss:$12 sps:$4 sm:$0xff]  }
 0x999   : > { %1758 = vmatpush1.bf16.msra.mxu0 %v2999_v17 }
 0x99a   : > { %1759 = vmatprep.subr.bf16.mxu0 %v3000_v6 }
 0x99d   : > { %1760 = vmatpush1.bf16.msra.mxu0 %v3001_v51 }
 0x99e   : > { %1761 = vmatprep.subr.bf16.mxu0 %v3002_v4 }
 0x9a1   : > { %1762 = vmatpush1.bf16.msra.mxu0 %v3003_v5  ;;  %v3017_v5 = vld [vmem:[#allocation8 + $0x28] sm:$0xff]  }
 0x9a2   : > { %1763 = vmatprep.subr.bf16.mxu0 %v3004_v57  ;;  %v3018_v57 = vld [vmem:[#allocation8 + $0x20] sm:$0xff]  }
 0x9a5   : > { %1764 = vmatpush1.bf16.msra.mxu0 %v3005_v58  ;;  %v3019_v58 = vld [vmem:[#allocation8 + $0x18] sm:$0xff]  }
 0x9a6   : > { %2757 = vmatprep.subr.bf16.mxu0 %v4387_v19 }
 0x9a8   : > { %2308 = vmatmul.mubr.msk.bf16.vlgmr.msra.gmra.mxu0 %vm4149_vm12, %v4383_v0 }
 0x9a9   : > { %2759 = vmatprep.mubr.msk.bf16.mxu0 %vm3281_vm0, %v4387_v19 }
 0xa48   : > { %v1682_v8 = vpop.f32.mrf.mxu0 }
 0xa49   : > { %v1683_v60 = vadd.f32 %v3836_v45, %v1682_v8  ;;  %v3021_v8 = vld [vmem:[#allocation8 + $0x8] sm:$0xff]  }
 0xa4a   : > { %v2715_v61 = vpop.f32.mrf.mxu0 }
 0xa4b   : > { %v1691_v62 = vadd.f32 %v4020_v52, %v1683_v60  ;;  %v3007_v52 = vld [vmem:[#allocation7 + $0x98] ss:$12 sps:$4 sm:$0xff]  }
 0xa4c   : > { %v1685_v63 = vpop.f32.mrf.mxu0  ;;  %v3022_v60 = vld [vmem:[#allocation8] sm:$0xff]  }
 0xa4d   : > { %vm1692_vm13 = vcmp.gt.f32.partialorder %v1691_v62, 0.5 }
 0xa4e   : > { %v2301_v25 = vsel %vm1692_vm13, 1.0, %v4387_v19  ;;  %vm2302_vm14 = vmpackc.low %vm1692_vm13, %vm1692_vm13  ;;  %v2716_v29 = vpop.f32.mrf.mxu0 }
 0xa4f   : > { %v1990_v30 = vsub.f32 1.0, %v2301_v25  ;;  %2734 = vmatmul.mubr.msk.bf16.vlgmr.msra.gmra.mxu1 %vm2302_vm14, %v4383_v0 }
 0xa50   : > { %2738 = vmatpush3.bf16.msra.mxu1 %v3006_v47  ;;  %2753 = vmatprep.mubr.msk.bf16.mxu1 %vm3281_vm0, %v4387_v19  ;;  %v3023_v47 = vld [vmem:[#allocation11 + $0x38] sm:$0xff]  }
 0xa51   : > { %v1991_v7 = vmul.f32 0.25, %v1990_v30  ;;  %2739 = vmatprep.subr.bf16.mxu1 %v4387_v19 }
 0xa53   : > { %v4166_v53 = vmul.f32 %v1991_v7, %v1691_v62  ;;  %v3024_v7 = vld [vmem:[#allocation11 + $0x30] sm:$0xff]  }
 0xa54   : > { %2740 = vmatpush3.bf16.msra.mxu1 %v3007_v52  ;;  %v3025_v52 = vld [vmem:[#allocation11 + $0x28] sm:$0xff]  }
 0xa55   : > { %2741 = vmatprep.subr.bf16.mxu1 %v4387_v19 }
 0xa58   : > { %2742 = vmatpush3.bf16.msra.mxu1 %v3008_v54  ;;  %v3027_v54 = vld [vmem:[#allocation11 + $0x18] sm:$0xff]  }
 0xa59   : > { %2743 = vmatprep.subr.bf16.mxu1 %v4387_v19 }
 0xa5c   : > { %2744 = vmatpush3.bf16.msra.mxu1 %v3009_v15  ;;  %v3028_v15 = vld [vmem:[#allocation11 + $0x10] sm:$0xff]  }
 0xa5d   : > { %2745 = vmatprep.subr.bf16.mxu1 %v4387_v19 }
 0xa60   : > { %2746 = vmatpush3.bf16.msra.mxu1 %v3010_v22  ;;  %v3030_v22 = vld [vmem:[%s4305_s5] ss:$0 sm:$0xff] }
 0xa61   : > { %2747 = vmatprep.subr.bf16.mxu1 %v4387_v19 }
 0xa64   : > { %2748 = vmatpush3.bf16.msra.mxu1 %v3011_v14 }
 0xa65   : > { %2749 = vmatprep.subr.bf16.mxu1 %v4387_v19 }
 0xa68   : > { %v1783_v2 = vpop.f32.mrf.mxu0  ;;  %2750 = vmatpush3.bf16.msra.mxu1 %v3012_v38 }
 0xa69   : > { %v1784_v24 = vadd.f32 %v1783_v2, %v3728_v43  ;;  %2751 = vmatprep.subr.bf16.mxu1 %v4387_v19 }
 0xa6a   : > { %v1785_v44 = vpop.f32.mrf.mxu0 }
 0xa6b   : > { %v1786_v1 = vadd.f32 %v1785_v44, %v3645_v36  ;;  %v4184_v27 = vadd.f32 %v1836_v56, %v1784_v24 }
 0xa6c   : > { %2752 = vmatpush3.bf16.msra.mxu1 %v3013_v3  ;;  %v1787_v17 = vpop.f32.mrf.mxu0 }
 0xa6d   : > { %v1840_v6 = vadd.f32 %v1837_v46, %v1786_v1  ;;  %2783 = vmatprep.subr.bf16.mxu1 %v4387_v19 }
 0xa6e   : > { %v1788_v9 = vpop.f32.mrf.mxu0 }
 0xa6f   : > { %2754 = vmatmul.mubr.msk.bf16.vlgmr.msra.gmra.mxu1 %vm4149_vm12, %v4383_v0  ;;  %vm1843_vm15 = vcmp.gt.f32.partialorder %v1840_v6, 0.5 }
 0xa70   : > { %2784 = vmatpush3.bf16.msra.mxu1 %v3698_v31  ;;  %2799 = vmatprep.mubr.msk.bf16.mxu1 %vm3281_vm0, %v4387_v19 }
 0xa71   : > { %2785 = vmatprep.subr.bf16.mxu1 %v4387_v19 }
 0xa74   : > { %2786 = vmatpush3.bf16.msra.mxu1 %v3701_v33 }
 0xa75   : > { %2787 = vmatprep.subr.bf16.mxu1 %v4387_v19 }
 0xa78   : > { %2788 = vmatpush3.bf16.msra.mxu1 %v3705_v35 }
 0xa79   : > { %2789 = vmatprep.subr.bf16.mxu1 %v4387_v19 }
 0xa7c   : > { %2790 = vmatpush3.bf16.msra.mxu1 %v3709_v37 }
 0xa7d   : > { %2791 = vmatprep.subr.bf16.mxu1 %v4387_v19 }
 0xa80   : > { %2792 = vmatpush3.bf16.msra.mxu1 %v3713_v39 }
 0xa81   : > { %2793 = vmatprep.subr.bf16.mxu1 %v4387_v19 }
 0xa84   : > { %2794 = vmatpush3.bf16.msra.mxu1 %v3717_v40 }
 0xa85   : > { %2795 = vmatprep.subr.bf16.mxu1 %v4387_v19 }
 0xa88   : > { %2796 = vmatpush3.bf16.msra.mxu1 %v3721_v41 }
 0xa89   : > { %2797 = vmatprep.subr.bf16.mxu1 %v4387_v19 }
 0xa8c   : > { %2798 = vmatpush3.bf16.msra.mxu1 %v4402_v26 }
 0xb0f   : > { %v1730_v36 = vpop.f32.mrf.mxu1 }
 0xb10   : > { %v1731_v31 = vadd.f32 %v3896_v18, %v1730_v36 }
 0xb11   : > { %v2735_v33 = vpop.f32.mrf.mxu1 }
 0xb12   : > { %v1736_v35 = vadd.f32 %v1731_v31, %v4132_v11  ;;  %v3014_v11 = vld [vmem:[#allocation5] sm:$0xf] }
 0xb13   : > { %v1733_v37 = vpop.f32.mrf.mxu1 }
 0xb14   : > { %2304 = vst [vmem:[%s3902_s2 + $0x10] sm:$0xff] %v1736_v35 }
 0xb15   : > { %v2736_v39 = vpop.f32.mrf.mxu1 }
 0xb2f   : > { %v1824_v43 = vpop.f32.mrf.mxu1 }
 0xb30   : > { %v1825_v40 = vadd.f32 %v1824_v43, %v3642_v34  ;;  %v3015_v34 = vld [vmem:[#allocation8 + $0x38] sm:$0xff]  }
 0xb31   : > { %v2755_v10 = vpop.f32.mrf.mxu1 }
 0xb32   : > { %v1841_v50 = vadd.f32 %v4081_v28, %v1825_v40  ;;  %v3016_v28 = vld [vmem:[#allocation8 + $0x30] sm:$0xff]  }
 0xb33   : > { %v1827_v41 = vpop.f32.mrf.mxu1 }
 0xb34   : > { %vm1844_vm1 = vcmp.gt.f32.partialorder %v1841_v50, 0.5 }
 0xb35   : > { %vm1845_vm2 = vmand %vm1843_vm15, %vm1844_vm1  ;;  %v2756_v26 = vpop.f32.mrf.mxu1 }
 0xb36   : > { %v2311_v51 = vsel %vm1845_vm2, 1.0, %v4387_v19 }
 0xb37   : > { %v1848_v4 = vpack.c.bf16 %v2311_v51, %v2311_v51 }
 0xb39   : > { %v1850_v12 = vsel %vm781_vm6, %v1848_v4, 0  ;;  %vm1842_vm6 = vcmp.gt.f32.partialorder %v4184_v27, 0.5 }
 0xb3a   : > { %2758 = vmatpush3.bf16.msra.mxu0 %v1850_v12 }
 0xb3b   : > { %2763 = vmatprep.subr.bf16.mxu0 %v4387_v19 }
 0xb3d   : > { %2760 = vmatmul.mubr.msk.bf16.vlgmr.msra.gmra.mxu0 %vm777_vm7, %v3014_v11 }
 0xb3e   : > { %2764 = vmatpush3.bf16.msra.mxu0 %v3015_v34  ;;  %2779 = vmatprep.mubr.msk.bf16.mxu0 %vm3281_vm0, %v4387_v19 }
 0xb3f   : > { %2765 = vmatprep.subr.bf16.mxu0 %v4387_v19 }
 0xb42   : > { %2766 = vmatpush3.bf16.msra.mxu0 %v3016_v28 }
 0xb43   : > { %2767 = vmatprep.subr.bf16.mxu0 %v4387_v19 }
 0xb46   : > { %2768 = vmatpush3.bf16.msra.mxu0 %v3017_v5 }
 0xb47   : > { %2769 = vmatprep.subr.bf16.mxu0 %v4387_v19 }
 0xb4a   : > { %2770 = vmatpush3.bf16.msra.mxu0 %v3018_v57 }
 0xb4b   : > { %2771 = vmatprep.subr.bf16.mxu0 %v4387_v19 }
 0xb4e   : > { %2772 = vmatpush3.bf16.msra.mxu0 %v3019_v58 }
 0xb4f   : > { %2773 = vmatprep.subr.bf16.mxu0 %v4387_v19 }
 0xb52   : > { %2774 = vmatpush3.bf16.msra.mxu0 %v3020_v59 }
 0xb53   : > { %2775 = vmatprep.subr.bf16.mxu0 %v4387_v19 }
 0xb56   : > { %2776 = vmatpush3.bf16.msra.mxu0 %v3021_v8 }
 0xb57   : > { %2777 = vmatprep.subr.bf16.mxu0 %v4387_v19 }
 0xb5a   : > { %2778 = vmatpush3.bf16.msra.mxu0 %v3022_v60 }
 0xb5b   : > { %2803 = vmatprep.subr.bf16.mxu0 %v4387_v19 }
 0xbfd   : > { %v1886_v61 = vpop.f32.mrf.mxu0 }
 0xbfe   : > { %v1892_v62 = vsel %vm1842_vm6, %v1886_v61, 0.0 }
 0xbff   : > { %v1896_v63 = vadd.f32 %v4114_v21, %v1892_v62  ;;  %v2761_v25 = vpop.f32.mrf.mxu0  ;;  %v3026_v21 = vld [vmem:[#allocation11 + $0x20] sm:$0xff]  }
 0xc01   : > { %vm1897_vm7 = vcmp.gt.f32.partialorder %v1896_v63, 0.5  ;;  %v1889_v29 = vpop.f32.mrf.mxu0 }
 0xc02   : > { %vm2314_vm3 = vmpackc.low %vm1897_vm7, %vm1897_vm7 }
 0xc03   : > { %v2762_v30 = vpop.f32.mrf.mxu0  ;;  %2780 = vmatmul.mubr.msk.bf16.vlgmr.msra.gmra.mxu0 %vm2314_vm3, %v4383_v0 }
 0xc04   : > { %2804 = vmatpush3.bf16.msra.mxu0 %v3023_v47  ;;  %2819 = vmatprep.mubr.msk.bf16.mxu0 %vm3281_vm0, %v4387_v19 }
 0xc05   : > { %2805 = vmatprep.subr.bf16.mxu0 %v4387_v19 }
 0xc08   : > { %2806 = vmatpush3.bf16.msra.mxu0 %v3024_v7 }
 0xc09   : > { %2807 = vmatprep.subr.bf16.mxu0 %v4387_v19 }
 0xc0c   : > { %2808 = vmatpush3.bf16.msra.mxu0 %v3025_v52 }
 0xc0d   : > { %2809 = vmatprep.subr.bf16.mxu0 %v4387_v19 }
 0xc10   : > { %2810 = vmatpush3.bf16.msra.mxu0 %v3026_v21 }
 0xc11   : > { %2811 = vmatprep.subr.bf16.mxu0 %v4387_v19 }
 0xc14   : > { %2812 = vmatpush3.bf16.msra.mxu0 %v3027_v54 }
 0xc15   : > { %2813 = vmatprep.subr.bf16.mxu0 %v4387_v19 }
 0xc18   : > { %2814 = vmatpush3.bf16.msra.mxu0 %v3028_v15 }
 0xc19   : > { %2815 = vmatprep.subr.bf16.mxu0 %v4387_v19 }
 0xc1c   : > { %2816 = vmatpush3.bf16.msra.mxu0 %v3029_v13 }
 0xc1d   : > { %2817 = vmatprep.subr.bf16.mxu0 %v4387_v19 }
 0xc20   : > { %2818 = vmatpush3.bf16.msra.mxu0 %v4406_v32 }
 0xcc3   : > { %v1935_v16 = vpop.f32.mrf.mxu0 }
 0xcc4   : > { %v1936_v49 = vadd.f32 %v3030_v22, %v1935_v16 }
 0xcc5   : > { %v2781_v20 = vpop.f32.mrf.mxu0 }
 0xcc6   : > { %v1941_v14 = vadd.f32 %v4146_v23, %v1936_v49 }
 0xcc7   : > { %v1938_v48 = vpop.f32.mrf.mxu0 }
 0xcc8   : > { %v1945_v42 = vadd.f32 %v4139_v55, %v1941_v14 }
 0xcc9   : > { %v2782_v2 = vpop.f32.mrf.mxu0 }
 0xcca   : > { %vm1946_vm0 = vcmp.gt.f32.partialorder %v1945_v42, 0.5 }
 0xccb   : > { %vm2317_vm4 = vmpackc.low %vm1946_vm0, %vm1946_vm0 }
 0xccc   : > { %2800 = vmatmul.mubr.msk.bf16.vlgmr.msra.gmra.mxu1 %vm2317_vm4, %v4383_v0 }
 0xd8c   : > { %v1984_v19 = vpop.f32.mrf.mxu1 }
 0xd8d   : > { %v1985_v32 = vadd.f32 %v3836_v45, %v1984_v19 }
 0xd8e   : > { %v2801_v38 = vpop.f32.mrf.mxu1 }
 0xd8f   : > { %v1993_v24 = vadd.f32 %v4166_v53, %v1985_v32 }
 0xd90   : > { %v1987_v56 = vpop.f32.mrf.mxu1 }
 0xd91   : > { %vm1994_vm5 = vcmp.gt.f32.partialorder %v1993_v24, 0.5 }
 0xd92   : > { %vm2320_vm8 = vmpackc.low %vm1994_vm5, %vm1994_vm5  ;;  %v2802_v23 = vpop.f32.mrf.mxu1 }
 0xd93   : > { %2820 = vmatmul.mubr.msk.bf16.vlgmr.msra.gmra.mxu0 %vm2320_vm8, %v4383_v0 }
 0xe53   : > { %v2032_v55 = vpop.f32.mrf.mxu0 }
 0xe54   : > { %v2033_v45 = vadd.f32 %v3896_v18, %v2032_v55 }
 0xe55   : > { %v2821_v44 = vpop.f32.mrf.mxu0 }
 0xe56   : > { %v2038_v53 = vadd.f32 %v2033_v45, %v1941_v14 }
 0xe57   : > { %v2035_v1 = vpop.f32.mrf.mxu0 }
 0xe58   : > { %2322 = vst [vmem:[%s3902_s2 + $0x18] sm:$0xff] %v2038_v53 }
 0xe59   : > { %v2822_v0 = vpop.f32.mrf.mxu0 }
 0xe5a   : > { %3202 = shalt.err (!%p3199_p4)
}
 0xe5b   : > { %s3203_s28 = scalar_lea.hbm %s4256_s21, 512  ;;  %s3207_s30 = scalar_lea.hbm %s4310_s10, 1024 }
 0xe5c   : > { %p3204_p11 = scmp.ne.s32.totalorder %s4256_s21, %s3203_s28  ;;  %p3208_p7 = scmp.lt.s32.totalorder %s4256_s21, %s4310_s10 }
 0xe5d   : > { %p3209_p12 = scmp.lt.s32.totalorder %s3207_s30, %s3203_s28 }
 0xe5e   : > { %p3205_p3 = pnand %p3204_p11, %p4409_p0 }
 0xe5f   : > { %p3210_p10 = por %p3209_p12, %p3208_p7 }
 0xe60   : > { %p3206_p5 = pneg %p3205_p3 }
 0xe62   : > { %p3211_p13 = pnand %p3210_p10, %p3206_p5 }
 0xe64   : > { %3214 = shalt.err (!%p3211_p13)
}
 0xe65   : > { %s3285_s24 = smov 128   ;;  %s3286_s19 = smov 256  }
 0xe66   : > { %s3287_s17 = smov 8  }
 0xe67   : > { %2845 = dma.vmem_to_hbm [thread:$0]  (%p4409_p0), %s4250_s6, 512, %s4256_s21, %s2042_s12, %s3285_s24, %s3286_s19, %s3287_s17  }
 0xe68 PF: > { %s2069_s18 = sand.u32 1, %s3253_s13   ;;  %p4410_p1 = scmp.ne.s32.totalorder %s4347_s20, 0 }
 0xe69   : > { %p4411_p2 = scmp.ge.s32.totalorder %s3265_s16, 2  ;;  %s2070_s26 = scalar_lea.sflag [#allocation4], %s2069_s18 }
 0xe6b   : > { %p2868_p6 = pnand %p4411_p2, %p4410_p1 }
 0xe6d   : > { %p2869_p9 = pneg %p2868_p6 }
 0xe6f   : > { %3248 = dma.done.wait (%p2869_p9), %s2070_s26, 512  }
 0xe70   : > { %3250 = vsyncadd (%p2869_p9), %s2070_s26, 4294966784  ;;  %p26_p8 = scmp.ge.s32.totalorder %s3447_s29, 4   ;;  %s4412_s13 = smov %s3257_s14 }
 0xe71   : > { %s4413_s14 = smov %s3261_s15  ;;  %s4414_s15 = smov %s3457_s27 }
 0xe72   : > { %s4415_s16 = smov %s3447_s29  ;;  %28 = sbr.rel (!%p26_p8) target bundleno = 13 (0xd), region = 131 }
 0xe77   :  { %2075 = vsyncpa [#allocation3], 1 }
 0xe78   :  { %2077 = vsyncpa [#allocation3 + $0x1], 1 }
 0xe79   :  { %2078 = vsyncpa [#allocation6], 1 }
 0xe7a   :  { %2079 = vsyncpa [#allocation9], 1 }
 0xe7b   :  { %2080 = vsyncpa [#allocation12], 1 }
 0xe7c   :  { %2081 = vsyncpa [#allocation4], 1 }
 0xe7d   :  { %2083 = vsyncpa [#allocation4 + $0x1], 1 }

</bundles_post_ra>
